<compile_context>
chip_gen: v7x
topology: tpu7x:2x2x1
jax: 0.10.0
libtpu: 0.0.40
codegen_flags: <defaults>
</compile_context>

<pallas_src>
import functools

import numpy as np
import jax
import jax.numpy as jnp
from jax import lax
from jax.experimental import pallas as pl
from jax.experimental.pallas import tpu as pltpu

WINDOW_SIZE = 10          # module default
SIGMA = 1.5
DATA_RANGE = 9.7
C1 = 0.01 ** 2
C2 = 0.03 ** 2


def _round_up(x, m):
    return (x + m - 1) // m * m


def _gaussian_1d(window_size=WINDOW_SIZE, sigma=SIGMA):
    xs = np.arange(window_size, dtype=np.float64)
    g = np.exp(-((xs - window_size // 2) ** 2) / (2.0 * sigma ** 2))
    return g / g.sum()


def make_gaussian_window(window_size=WINDOW_SIZE, sigma=SIGMA):
    """Deterministic 2D Gaussian window (same math as create_window)."""
    g = _gaussian_1d(window_size, sigma)
    return jnp.asarray(np.outer(g, g).astype(np.float32))


def _banded_matrices(h, w, window_size, out_h, out_w, h_pad):
    """Av (out_h, h_pad), Ah (w, out_w): conv2d(zero_pad(X), outer(g,g)) = Av@X@Ah.

    Columns of Av for padded rows (r >= h) stay zero, so padding H to a
    sublane multiple never changes the result.
    """
    g = _gaussian_1d(window_size)
    pad = window_size // 2
    av = np.zeros((out_h, h_pad), np.float64)
    for i in range(out_h):
        for r in range(h):
            k = r - i + pad
            if 0 <= k < window_size:
                av[i, r] = g[k]
    ah = np.zeros((w, out_w), np.float64)
    for c in range(w):
        for j in range(out_w):
            k = c - j + pad
            if 0 <= k < window_size:
                ah[c, j] = g[k]
    return av.astype(np.float32), ah.astype(np.float32)


def _per_plane_vmem_bytes(h_pad, w, out_h, out_w):
    """Conservative f32 VMEM footprint per plane, incl. (8,128) tile padding."""
    tile_in = h_pad * _round_up(w, 128) * 4
    tile_mid = h_pad * _round_up(out_w, 128) * 4
    tile_out = _round_up(out_h, 8) * _round_up(out_w, 128) * 4
    tile_avb = _round_up(out_h, 8) * _round_up(h_pad, 128) * 4
    # 2x2 double-buffered inputs + x1/x2 + 5-way fused stats  |  horizontal
    # pass result + broadcast Av  |  conv outputs + elementwise temps/map.
    return ((2 * 2 + 2 + 5) * tile_in
            + 5 * tile_mid + 5 * tile_avb
            + (5 + 8) * tile_out)


def _choose_planes_per_block(nc, per_plane_bytes, budget_bytes=8 << 20):
    """Planes per grid step under a per-block VMEM budget, >=2 steps if nc>=2."""
    p = max(1, min(nc, budget_bytes // max(per_plane_bytes, 1)))
    if nc >= 2:
        # At least 2 grid steps so both v7x TensorCores get work; the extra
        # ~0.35 us per step is negligible on single-core v5e/v6e.
        p = min(p, -(-nc // 2))
    num_blocks = -(-nc // p)
    return p, num_blocks


def _split_bf16(x):
    """hi/lo bf16 split of an f32 array (for explicit bf16_3x matmuls)."""
    hi = x.astype(jnp.bfloat16)
    lo = (x - hi.astype(jnp.float32)).astype(jnp.bfloat16)
    return hi, lo


def _ssim_kernel(t1_ref, t2_ref, av_ref, ah_ref, out_ref, *,
                 planes, h_pad, out_h, out_w, nc_total, data_range,
                 needs_mask):
    """One block of P planes, plane-major layout (P*Hp, W)."""
    p = planes
    scale = np.float32(0.5 / float(data_range))
    x1 = t1_ref[...] * scale + scale          # fused affine: (x*0.5+0.5)/range
    x2 = t2_ref[...] * scale + scale

    # Hoisted products + fused left operand: all five statistics share one
    # horizontal-pass matmul (single MXU weight push instead of five).
    stats = jnp.concatenate([x1, x2, x1 * x1, x2 * x2, x1 * x2], axis=0)

    # bf16_3x (== lax.Precision.HIGH) operand splits; constants split in-kernel
    # (they are only (out_h, Hp)/(W, out_w) -- a few KB).
    ah_hi, ah_lo = _split_bf16(ah_ref[...])
    av_hi, av_lo = _split_bf16(av_ref[...])
    s_hi, s_lo = _split_bf16(stats)

    # Horizontal Gaussian pass: dense matmul (5*P*Hp, W) @ (W, out_w).
    t = jnp.dot(s_hi, ah_hi, preferred_element_type=jnp.float32)
    t += jnp.dot(s_hi, ah_lo, preferred_element_type=jnp.float32)
    t += jnp.dot(s_lo, ah_hi, preferred_element_type=jnp.float32)
    t = t.reshape(5 * p, h_pad, out_w)        # Hp % 8 == 0 -> tile-aligned split

    # Vertical Gaussian pass: batched matmul over the 5*P (stat, plane) pairs.
    t_hi, t_lo = _split_bf16(t)
    av_hi_b = jnp.broadcast_to(av_hi[None], (5 * p, out_h, h_pad))
    av_lo_b = jnp.broadcast_to(av_lo[None], (5 * p, out_h, h_pad))
    conv = jnp.einsum('bzh,bhq->bzq', av_hi_b, t_hi,
                      preferred_element_type=jnp.float32)
    conv += jnp.einsum('bzh,bhq->bzq', av_hi_b, t_lo,
                       preferred_element_type=jnp.float32)
    conv += jnp.einsum('bzh,bhq->bzq', av_lo_b, t_hi,
                       preferred_element_type=jnp.float32)

    mu1 = conv[0 * p:1 * p]
    mu2 = conv[1 * p:2 * p]
    s11 = conv[2 * p:3 * p]
    s22 = conv[3 * p:4 * p]
    s12 = conv[4 * p:5 * p]

    mu1_sq = mu1 * mu1
    mu2_sq = mu2 * mu2
    mu1_mu2 = mu1 * mu2
    sigma1_sq = s11 - mu1_sq
    sigma2_sq = s22 - mu2_sq
    sigma12 = s12 - mu1_mu2

    num = (2.0 * mu1_mu2 + C1) * (2.0 * sigma12 + C2)
    den = (mu1_sq + mu2_sq + C1) * (sigma1_sq + sigma2_sq + C2)
    ssim_map = num * pl.reciprocal(den)       # divide on the EUP path

    if needs_mask:
        # Zero planes that only exist because nc was padded to a multiple of P.
        # Single integer compare (no division) on a plane-index iota.
        valid = jnp.minimum(p, nc_total - pl.program_id(0) * p)
        plane = lax.broadcasted_iota(jnp.int32, ssim_map.shape, 0)
        ssim_map = jnp.where(plane < valid, ssim_map, 0.0)

    out_ref[...] = jnp.broadcast_to(jnp.sum(ssim_map), (8, 128))


def ssim_pallas(tensor1, tensor2,
                window_size=WINDOW_SIZE, data_range=DATA_RANGE):
    """size_average=True path of SSIM.forward -> scalar mean of the SSIM map."""
    n, c, h, w = tensor1.shape
    nc = n * c
    pad = window_size // 2
    out_h = h + 2 * pad - window_size + 1
    out_w = w + 2 * pad - window_size + 1
    h_pad = _round_up(h, 8)                   # sublane-aligned rows (Av zero-padded)

    per_plane = _per_plane_vmem_bytes(h_pad, w, out_h, out_w)
    planes, num_blocks = _choose_planes_per_block(nc, per_plane)
    nc_pad = planes * num_blocks

    t1 = tensor1.astype(jnp.float32).reshape(nc, h, w)
    t2 = tensor2.astype(jnp.float32).reshape(nc, h, w)
    if nc_pad != nc or h_pad != h:
        zpad = ((0, nc_pad - nc), (0, h_pad - h), (0, 0))
        t1 = jnp.pad(t1, zpad)
        t2 = jnp.pad(t2, zpad)
    # Plane-major layout: plain reshape, no HBM transpose / extra copies.
    t1 = t1.reshape(nc_pad * h_pad, w)
    t2 = t2.reshape(nc_pad * h_pad, w)

    av_np, ah_np = _banded_matrices(h, w, window_size, out_h, out_w, h_pad)
    av = jnp.asarray(av_np)                   # (out_h, h_pad)
    ah = jnp.asarray(ah_np)                   # (w, out_w)

    rows_per_block = planes * h_pad

    kernel = functools.partial(
        _ssim_kernel, planes=planes, h_pad=h_pad, out_h=out_h, out_w=out_w,
        nc_total=nc, data_range=float(data_range),
        needs_mask=(nc_pad != nc))

    partials = pl.pallas_call(
        kernel,
        out_shape=jax.ShapeDtypeStruct((num_blocks * 8, 128), jnp.float32),
        grid_spec=pltpu.PrefetchScalarGridSpec(
            num_scalar_prefetch=0,
            grid=(num_blocks,),
            in_specs=[
                pl.BlockSpec((rows_per_block, w), lambda i: (i, 0)),
                pl.BlockSpec((rows_per_block, w), lambda i: (i, 0)),
                pl.BlockSpec((out_h, h_pad), lambda i: (0, 0)),
                pl.BlockSpec((w, out_w), lambda i: (0, 0)),
            ],
            out_specs=pl.BlockSpec((8, 128), lambda i: (i, 0)),
        ),
        compiler_params=pltpu.CompilerParams(
            dimension_semantics=("parallel",),
            vmem_limit_bytes=32 * 1024 * 1024),
    )(t1, t2, av, ah)

    per_block = partials.reshape(num_blocks, 8, 128)[:, 0, 0]
    return jnp.sum(per_block) / np.float32(nc * out_h * out_w)


def ssim_ref_jax(tensor1, tensor2, window,
                 window_size=WINDOW_SIZE, data_range=DATA_RANGE):
    """Pure-JAX reference mirroring the PyTorch _ssim (size_average=True)."""
    n, c, h, w = tensor1.shape
    pad = window_size // 2
    t1 = (tensor1.astype(jnp.float32) * 0.5 + 0.5) / data_range
    t2 = (tensor2.astype(jnp.float32) * 0.5 + 0.5) / data_range
    wk = jnp.broadcast_to(window[None, None], (c, 1, window_size, window_size))

    def conv(x):
        return lax.conv_general_dilated(
            x, wk, (1, 1), [(pad, pad), (pad, pad)],
            dimension_numbers=("NCHW", "OIHW", "NCHW"),
            feature_group_count=c,
            precision=lax.Precision.HIGHEST)

    mu1 = conv(t1)
    mu2 = conv(t2)
    mu1_sq, mu2_sq, mu1_mu2 = mu1 * mu1, mu2 * mu2, mu1 * mu2
    sigma1_sq = conv(t1 * t1) - mu1_sq
    sigma2_sq = conv(t2 * t2) - mu2_sq
    sigma12 = conv(t1 * t2) - mu1_mu2
    ssim_map = ((2 * mu1_mu2 + C1) * (2 * sigma12 + C2)) / (
        (mu1_sq + mu2_sq + C1) * (sigma1_sq + sigma2_sq + C2))
    return ssim_map.mean()


if __name__ == "__main__":
    key = jax.random.PRNGKey(0)
    k1, k2 = jax.random.split(key)
    shape = (2, 4, 16, 16)                     # small NCHW example
    tensor1 = jax.random.normal(k1, shape, dtype=jnp.float32)
    tensor2 = jax.random.normal(k2, shape, dtype=jnp.float32)

    out = ssim_pallas(tensor1, tensor2)
    out = jax.block_until_ready(out)

    window = make_gaussian_window()            # deterministic in-script "weights"
    ref = ssim_ref_jax(tensor1, tensor2, window)
    np.testing.assert_allclose(np.asarray(out), np.asarray(ref),
                               rtol=1e-3, atol=1e-4)
    print("KERNEL_OK")
</pallas_src>

<mosaic_0001>
module attributes {stable_mosaic.version = 11 : i64} {
  func.func @_ssim_kernel(%arg0: i32, %arg1: memref<64x16xf32, #tpu.memory_space<vmem>>, %arg2: memref<64x16xf32, #tpu.memory_space<vmem>>, %arg3: memref<17x16xf32, #tpu.memory_space<vmem>>, %arg4: memref<16x17xf32, #tpu.memory_space<vmem>>, %arg5: memref<8x128xf32, #tpu.memory_space<vmem>>) attributes {dimension_semantics = [#tpu.dimension_semantics<parallel>], iteration_bounds = array<i64: 2>, scalar_prefetch = 0 : i64, scratch_operands = 0 : i64, tpu.core_type = #tpu.core_type<tc>, window_params = [{transform_indices = @transform_0, window_bounds = array<i64: 64, 16>}, {transform_indices = @transform_1, window_bounds = array<i64: 64, 16>}, {pipeline_mode = #tpu.pipeline_mode<synchronous>, transform_indices = @transform_2, window_bounds = array<i64: 17, 16>}, {pipeline_mode = #tpu.pipeline_mode<synchronous>, transform_indices = @transform_3, window_bounds = array<i64: 16, 17>}, {transform_indices = @transform_4, window_bounds = array<i64: 8, 128>}]} {
    %c0 = arith.constant 0 : index
    %c0_0 = arith.constant 0 : index
    %0 = vector.load %arg1[%c0, %c0_0] : memref<64x16xf32, #tpu.memory_space<vmem>>, vector<64x16xf32>
    %cst = arith.constant 0.0515463911 : f32
    %1 = vector.broadcast %cst : f32 to vector<64x16xf32>
    %2 = arith.mulf %0, %1 : vector<64x16xf32>
    %cst_1 = arith.constant 0.0515463911 : f32
    %3 = vector.broadcast %cst_1 : f32 to vector<64x16xf32>
    %4 = arith.addf %2, %3 : vector<64x16xf32>
    %c0_2 = arith.constant 0 : index
    %c0_3 = arith.constant 0 : index
    %5 = vector.load %arg2[%c0_2, %c0_3] : memref<64x16xf32, #tpu.memory_space<vmem>>, vector<64x16xf32>
    %cst_4 = arith.constant 0.0515463911 : f32
    %6 = vector.broadcast %cst_4 : f32 to vector<64x16xf32>
    %7 = arith.mulf %5, %6 : vector<64x16xf32>
    %cst_5 = arith.constant 0.0515463911 : f32
    %8 = vector.broadcast %cst_5 : f32 to vector<64x16xf32>
    %9 = arith.addf %7, %8 : vector<64x16xf32>
    %10 = arith.mulf %4, %4 : vector<64x16xf32>
    %11 = arith.mulf %9, %9 : vector<64x16xf32>
    %12 = arith.mulf %4, %9 : vector<64x16xf32>
    %13 = tpu.concatenate %4, %9, %10, %11, %12 in 0 : vector<64x16xf32>, vector<64x16xf32>, vector<64x16xf32>, vector<64x16xf32>, vector<64x16xf32> -> vector<320x16xf32>
    %c0_6 = arith.constant 0 : index
    %c0_7 = arith.constant 0 : index
    %14 = vector.load %arg4[%c0_6, %c0_7] : memref<16x17xf32, #tpu.memory_space<vmem>>, vector<16x17xf32>
    %15 = arith.truncf %14 : vector<16x17xf32> to vector<16x17xbf16>
    %16 = arith.extf %15 : vector<16x17xbf16> to vector<16x17xf32>
    %17 = arith.subf %14, %16 : vector<16x17xf32>
    %18 = arith.truncf %17 : vector<16x17xf32> to vector<16x17xbf16>
    %c0_8 = arith.constant 0 : index
    %c0_9 = arith.constant 0 : index
    %19 = vector.load %arg3[%c0_8, %c0_9] : memref<17x16xf32, #tpu.memory_space<vmem>>, vector<17x16xf32>
    %20 = arith.truncf %19 : vector<17x16xf32> to vector<17x16xbf16>
    %21 = arith.extf %20 : vector<17x16xbf16> to vector<17x16xf32>
    %22 = arith.subf %19, %21 : vector<17x16xf32>
    %23 = arith.truncf %22 : vector<17x16xf32> to vector<17x16xbf16>
    %24 = arith.truncf %13 : vector<320x16xf32> to vector<320x16xbf16>
    %25 = arith.extf %24 : vector<320x16xbf16> to vector<320x16xf32>
    %26 = arith.subf %13, %25 : vector<320x16xf32>
    %27 = arith.truncf %26 : vector<320x16xf32> to vector<320x16xbf16>
    %cst_10 = arith.constant dense<0.000000e+00> : vector<320x17xf32>
    %28 = tpu.matmul %24, %15, %cst_10 {dimension_numbers = #tpu.dot_dimension_numbers<[1], [0], [0], [1], [0, 0, 1, 1], [], []>} : vector<320x16xbf16>, vector<16x17xbf16>, vector<320x17xf32> -> vector<320x17xf32>
    %cst_11 = arith.constant dense<0.000000e+00> : vector<320x17xf32>
    %29 = tpu.matmul %24, %18, %cst_11 {dimension_numbers = #tpu.dot_dimension_numbers<[1], [0], [0], [1], [0, 0, 1, 1], [], []>} : vector<320x16xbf16>, vector<16x17xbf16>, vector<320x17xf32> -> vector<320x17xf32>
    %30 = arith.addf %28, %29 : vector<320x17xf32>
    %cst_12 = arith.constant dense<0.000000e+00> : vector<320x17xf32>
    %31 = tpu.matmul %27, %15, %cst_12 {dimension_numbers = #tpu.dot_dimension_numbers<[1], [0], [0], [1], [0, 0, 1, 1], [], []>} : vector<320x16xbf16>, vector<16x17xbf16>, vector<320x17xf32> -> vector<320x17xf32>
    %32 = arith.addf %30, %31 : vector<320x17xf32>
    %33 = vector.shape_cast %32 : vector<320x17xf32> to vector<20x16x17xf32>
    %34 = arith.truncf %33 : vector<20x16x17xf32> to vector<20x16x17xbf16>
    %35 = arith.extf %34 : vector<20x16x17xbf16> to vector<20x16x17xf32>
    %36 = arith.subf %33, %35 : vector<20x16x17xf32>
    %37 = arith.truncf %36 : vector<20x16x17xf32> to vector<20x16x17xbf16>
    %38 = vector.shape_cast %20 : vector<17x16xbf16> to vector<1x17x16xbf16>
    %39 = vector.shape_cast %38 : vector<1x17x16xbf16> to vector<1x17x16xbf16>
    %40 = vector.broadcast %39 : vector<1x17x16xbf16> to vector<20x17x16xbf16>
    %41 = vector.shape_cast %23 : vector<17x16xbf16> to vector<1x17x16xbf16>
    %42 = vector.shape_cast %41 : vector<1x17x16xbf16> to vector<1x17x16xbf16>
    %43 = vector.broadcast %42 : vector<1x17x16xbf16> to vector<20x17x16xbf16>
    "tpu.trace_start"() <{level = 10 : i32, message = "bzh,bhq->bzq"}> : () -> ()
    %cst_13 = arith.constant dense<0.000000e+00> : vector<20x17x17xf32>
    %44 = tpu.matmul %40, %34, %cst_13 {dimension_numbers = #tpu.dot_dimension_numbers<[2], [1], [1], [2], [0, 0, 0, 1, 1, 2], [0], [0]>} : vector<20x17x16xbf16>, vector<20x16x17xbf16>, vector<20x17x17xf32> -> vector<20x17x17xf32>
    %cst_14 = arith.constant dense<0.000000e+00> : vector<20x17x17xf32>
    %45 = tpu.matmul %40, %37, %cst_14 {dimension_numbers = #tpu.dot_dimension_numbers<[2], [1], [1], [2], [0, 0, 0, 1, 1, 2], [0], [0]>} : vector<20x17x16xbf16>, vector<20x16x17xbf16>, vector<20x17x17xf32> -> vector<20x17x17xf32>
    "tpu.trace_stop"() : () -> ()
    %46 = arith.addf %44, %45 : vector<20x17x17xf32>
    "tpu.trace_start"() <{level = 10 : i32, message = "bzh,bhq->bzq"}> : () -> ()
    %cst_15 = arith.constant dense<0.000000e+00> : vector<20x17x17xf32>
    %47 = tpu.matmul %43, %34, %cst_15 {dimension_numbers = #tpu.dot_dimension_numbers<[2], [1], [1], [2], [0, 0, 0, 1, 1, 2], [0], [0]>} : vector<20x17x16xbf16>, vector<20x16x17xbf16>, vector<20x17x17xf32> -> vector<20x17x17xf32>
    "tpu.trace_stop"() : () -> ()
    %48 = arith.addf %46, %47 : vector<20x17x17xf32>
    %49 = vector.extract_strided_slice %48 {offsets = [0, 0, 0], sizes = [4, 17, 17], strides = [1, 1, 1]} : vector<20x17x17xf32> to vector<4x17x17xf32>
    %50 = vector.extract_strided_slice %48 {offsets = [4, 0, 0], sizes = [4, 17, 17], strides = [1, 1, 1]} : vector<20x17x17xf32> to vector<4x17x17xf32>
    %51 = vector.extract_strided_slice %48 {offsets = [8, 0, 0], sizes = [4, 17, 17], strides = [1, 1, 1]} : vector<20x17x17xf32> to vector<4x17x17xf32>
    %52 = vector.extract_strided_slice %48 {offsets = [12, 0, 0], sizes = [4, 17, 17], strides = [1, 1, 1]} : vector<20x17x17xf32> to vector<4x17x17xf32>
    %53 = vector.extract_strided_slice %48 {offsets = [16, 0, 0], sizes = [4, 17, 17], strides = [1, 1, 1]} : vector<20x17x17xf32> to vector<4x17x17xf32>
    %54 = arith.mulf %49, %49 : vector<4x17x17xf32>
    %55 = arith.mulf %50, %50 : vector<4x17x17xf32>
    %56 = arith.mulf %49, %50 : vector<4x17x17xf32>
    %57 = arith.subf %51, %54 : vector<4x17x17xf32>
    %58 = arith.subf %52, %55 : vector<4x17x17xf32>
    %59 = arith.subf %53, %56 : vector<4x17x17xf32>
    %cst_16 = arith.constant 2.000000e+00 : f32
    %60 = vector.broadcast %cst_16 : f32 to vector<4x17x17xf32>
    %61 = arith.mulf %60, %56 : vector<4x17x17xf32>
    %cst_17 = arith.constant 9.99999974E-5 : f32
    %62 = vector.broadcast %cst_17 : f32 to vector<4x17x17xf32>
    %63 = arith.addf %61, %62 : vector<4x17x17xf32>
    %cst_18 = arith.constant 2.000000e+00 : f32
    %64 = vector.broadcast %cst_18 : f32 to vector<4x17x17xf32>
    %65 = arith.mulf %64, %59 : vector<4x17x17xf32>
    %cst_19 = arith.constant 8.99999984E-4 : f32
    %66 = vector.broadcast %cst_19 : f32 to vector<4x17x17xf32>
    %67 = arith.addf %65, %66 : vector<4x17x17xf32>
    %68 = arith.mulf %63, %67 : vector<4x17x17xf32>
    %69 = arith.addf %54, %55 : vector<4x17x17xf32>
    %cst_20 = arith.constant 9.99999974E-5 : f32
    %70 = vector.broadcast %cst_20 : f32 to vector<4x17x17xf32>
    %71 = arith.addf %69, %70 : vector<4x17x17xf32>
    %72 = arith.addf %57, %58 : vector<4x17x17xf32>
    %cst_21 = arith.constant 8.99999984E-4 : f32
    %73 = vector.broadcast %cst_21 : f32 to vector<4x17x17xf32>
    %74 = arith.addf %72, %73 : vector<4x17x17xf32>
    %75 = arith.mulf %71, %74 : vector<4x17x17xf32>
    %76 = tpu.reciprocal %75 : vector<4x17x17xf32> -> vector<4x17x17xf32>
    %77 = arith.mulf %68, %76 : vector<4x17x17xf32>
    %78 = vector.shape_cast %77 : vector<4x17x17xf32> to vector<1x4x17x17xf32>
    %cst_22 = arith.constant dense<0.000000e+00> : vector<1xf32>
    %79 = vector.multi_reduction <add>, %78, %cst_22 [1, 2, 3] : vector<1x4x17x17xf32> to vector<1xf32>
    %80 = vector.shape_cast %79 : vector<1xf32> to vector<1x1x1x1xf32>
    %81 = vector.extract %80[0, 0, 0, 0] : f32 from vector<1x1x1x1xf32>
    %82 = vector.broadcast %81 : f32 to vector<8x128xf32>
    %c0_23 = arith.constant 0 : index
    %c0_24 = arith.constant 0 : index
    %83 = vector.load %arg5[%c0_23, %c0_24] : memref<8x128xf32, #tpu.memory_space<vmem>>, vector<8x128xf32>
    tpu.vector_store %arg5[%c0_23, %c0_24], %82 {strides = array<i32>} : memref<8x128xf32, #tpu.memory_space<vmem>>, vector<8x128xf32>,
    return
  }
  func.func @transform_0(%arg0: i32) -> (i32, i32) {
    %c0_i32 = arith.constant 0 : i32
    %c0_i32_0 = arith.constant 0 : i32
    return %arg0, %c0_i32 : i32, i32
  }
  func.func @transform_1(%arg0: i32) -> (i32, i32) {
    %c0_i32 = arith.constant 0 : i32
    %c0_i32_0 = arith.constant 0 : i32
    return %arg0, %c0_i32 : i32, i32
  }
  func.func @transform_2(%arg0: i32) -> (i32, i32) {
    %c0_i32 = arith.constant 0 : i32
    %c0_i32_0 = arith.constant 0 : i32
    %c0_i32_1 = arith.constant 0 : i32
    return %c0_i32, %c0_i32_0 : i32, i32
  }
  func.func @transform_3(%arg0: i32) -> (i32, i32) {
    %c0_i32 = arith.constant 0 : i32
    %c0_i32_0 = arith.constant 0 : i32
    %c0_i32_1 = arith.constant 0 : i32
    return %c0_i32, %c0_i32_0 : i32, i32
  }
  func.func @transform_4(%arg0: i32) -> (i32, i32) {
    %c0_i32 = arith.constant 0 : i32
    %c0_i32_0 = arith.constant 0 : i32
    return %arg0, %c0_i32 : i32, i32
  }
}

</mosaic_0001>

<bundles_post_ra>
// kernel: tpu_custom_call.1
= control target key start
LH: loop header
LB: loop body
LE: loop exit
PB: predicated region body
PF: predicated region fallthrough
CT: control target
= control target key end

     0   :  { %9 = vsyncpa [#allocation3], 0  ;;  %s7349_s0 = inlined_call_operand.vmem [shape: f32[128,16], index: 0, kind: input, shape index: {}]   ;;  %s7350_s1 = inlined_call_operand.vmem [shape: f32[128,16], index: 1, kind: input, shape index: {}]   ;;  %s7351_s2 = inlined_call_operand.vmem [shape: f32[17,16], index: 2, kind: input, shape index: {}]   ;;  %s7352_s3 = inlined_call_operand.vmem [shape: f32[16,17], index: 3, kind: input, shape index: {}]   ;;  %s7353_s4 = inlined_call_operand.hbm [shape: f32[16,128], index: 4, kind: output, shape index: {}]  }
   0x1   :  { %11 = vsyncpa [#allocation3 + $0x1], 0  ;;  %s5885_s15 = smov 0   ;;  %s5887_s16 = smov 0  }
   0x2   :  { %s5889_s17 = smov 0   ;;  %s5891_s18 = smov 0  }
   0x3 LB: > { %s5906_s19 = sadd.s32 4294967295, %s5857_s18   ;;  %s4583_s20 = sadd.s32 4294967294, %s5857_s18   ;;  %s5857_s18 = sphi %s5891_s18, %s7441_s18   ;;  %s5853_s17 = sphi %s5889_s17, %s7440_s17   ;;  %s5849_s16 = sphi %s5887_s16, %s7439_s16   ;;  %s5845_s15 = sphi %s5885_s15, %s7438_s15  }
   0x4   : > { %s5910_s21 = sadd.s32 1, %s5857_s18   ;;  %s118_s22 = sadd.s32 1, %s5853_s17 }
   0x5   : > { %s115_s23 = ssub.s32 %s5857_s18, %s5910_s21  ;;  %p128_p0 = scmp.ne.s32.totalorder %s5853_s17, %s5849_s16 }
   0x6   : > { %p116_p1 = scmp.eq.s32.totalorder %s115_s23, 0  ;;  %p129_p2 = scmp.eq.s32.totalorder %s5906_s19, 1 }
   0x7   : > { %p134_p3 = scmp.ne.s32.totalorder %s5849_s16, %s5845_s15  ;;  %p135_p4 = scmp.eq.s32.totalorder %s4583_s20, 1 }
   0x8   : > { %s5921_s24 = scalar_select %p116_p1, %s5853_s17, %s118_s22  }
   0x9   : > { %p5923_p5 = por %p129_p2, %p128_p0  ;;  %p5927_p6 = por %p135_p4, %p134_p3 }
   0xa   : > { %p4586_p7 = scmp.ge.s32.totalorder %s5857_s18, 1  ;;  %p177_p8 = scmp.lt.s32.totalorder %s5857_s18, 3 }
   0xc   : > { %p178_p9 = pnand %p4586_p7, %p177_p8 }
   0xe   : > { %181 = sbr.rel (%p178_p9) target bundleno = 1279 (0x4ff), region = 36 }
  0x15   : > { %v293_v0 = vld [vmem:[%s7352_s3] sm:$0xff]  ;;  %v294_v1 = vld [vmem:[%s7352_s3 + $0x8] sm:$0xff]  ;;  %s4588_s5 = sshll.u32 %s5906_s19, 3  ;;  %vm434_vm0 = vcmask 130048   ;;  %vm4462_vm1 = vcmask 138240   ;;  %vm4466_vm2 = vcmask 131072  }
  0x16   : > { %v5940_v2 = vpack.c.bf16 %v294_v1, %v293_v0  ;;  %p209_p10 = scmp.lt.s32.totalorder %s4588_s5, 15  ;;  %s205_s28 = sand.u32 1, %s5849_s16  }
  0x17   : > { %s4587_s29 = sshll.u32 %s205_s28, 3  ;;  %s4499_s11 = scalar_lea.sflag [#allocation3], %s205_s28 }
  0x18   : > { %v296_v3 = vunpack.c.l.bf16 %v5940_v2  ;;  %v297_v4 = vunpack.c.h.bf16 %v5940_v2  ;;  %s7443_s5 = smov (!%p209_p10, %s4588_s5), 15  ;;  %s207_s30 = scalar_lea.vmem [#allocation2], %s4587_s29 }
  0x19   : > { %s4589_s6 = sshll.u32 %s7443_s5, 3  ;;  %s4512_s5 = sshll.u32 %s207_s30, 4  ;;  %s7304_s5 = int_to_ptr.vmem [resolvable:$true] %s4512_s5 }
  0x1a   : > { %v298_v5 = vsub.f32 %v293_v0, %v296_v3  ;;  %v299_v6 = vsub.f32 %v294_v1, %v297_v4  ;;  %s212_s9 = scalar_lea.vmem %s7349_s0, %s4589_s6  ;;  %s5950_s12 = scalar_lea.vmem %s7350_s1, %s4589_s6 }
  0x1b   : > { %v221_v8 = vld [vmem:[%s212_s9] sm:$0xff]  ;;  %v222_v9 = vld [vmem:[%s212_s9 + $0x8] sm:$0xff]  ;;  %v223_v10 = vld [vmem:[%s212_s9 + $0x10] sm:$0xff]  ;;  %s4773_s6 = sshll.u32 %s5906_s19, 7  ;;  %s5859_s19 = smov [#allocation2]  }
  0x1c   : > { %v300_v7 = vpack.c.bf16 %v299_v6, %v298_v5  ;;  %v229_v11 = vmul.f32 0.05154639, %v221_v8  ;;  %v230_v12 = vmul.f32 0.05154639, %v222_v9  ;;  %v224_v13 = vld [vmem:[%s212_s9 + $0x18] sm:$0xff]  ;;  %v225_v14 = vld [vmem:[%s212_s9 + $0x20] sm:$0xff]  ;;  %s7309_s10 = scalar_lea.hbm %s7353_s4, %s4773_s6 }
  0x1d   : > { %v231_v15 = vmul.f32 0.05154639, %v223_v10  ;;  %v232_v16 = vmul.f32 0.05154639, %v224_v13  ;;  %v226_v17 = vld [vmem:[%s212_s9 + $0x28] sm:$0xff]  ;;  %v227_v18 = vld [vmem:[%s212_s9 + $0x30] sm:$0xff] }
  0x1e   : > { %5019 = vmatprep.subr.bf16.mxu0 %v300_v7  ;;  %v5952_v19 = vadd.f32 0.05154639, %v229_v11  ;;  %v5954_v20 = vadd.f32 0.05154639, %v230_v12  ;;  %v233_v21 = vmul.f32 0.05154639, %v225_v14 }
  0x1f   : > { %5020 = vmatpush3.bf16.msra.mxu0 %v300_v7  ;;  %v5956_v22 = vadd.f32 0.05154639, %v231_v15  ;;  %v5958_v23 = vadd.f32 0.05154639, %v232_v16  ;;  %v234_v24 = vmul.f32 0.05154639, %v226_v17 }
  0x20   : > { %5061 = vmatprep.subr.bf16.mxu0 %v5940_v2  ;;  %v5963_v25 = vpack.c.bf16 %v5954_v20, %v5952_v19  ;;  %v5965_v26 = vadd.f32 0.05154639, %v233_v21  ;;  %v228_v27 = vld [vmem:[%s212_s9 + $0x38] sm:$0xff]  ;;  %v235_v28 = vmul.f32 0.05154639, %v227_v18  ;;  %v245_v29 = vld [vmem:[%s5950_s12] sm:$0xff]  ;;  %v6041_v1 = vmul.f32 %v5952_v19, %v5952_v19 }
  0x21   : > { %v5970_v30 = vpack.c.bf16 %v5958_v23, %v5956_v22  ;;  %v5972_v31 = vadd.f32 0.05154639, %v234_v24  ;;  %v236_v32 = vmul.f32 0.05154639, %v228_v27  ;;  %v246_v33 = vld [vmem:[%s5950_s12 + $0x8] sm:$0xff]  ;;  %v247_v41 = vld [vmem:[%s5950_s12 + $0x10] sm:$0xff]  ;;  %v6045_v3 = vmul.f32 %v5954_v20, %v5954_v20 }
  0x22   : > { %5021 = vmatprep.mubr.msk.bf16.mxu0 %vm434_vm0, %v5963_v25  ;;  %v253_v34 = vmul.f32 0.05154639, %v245_v29  ;;  %v254_v35 = vmul.f32 0.05154639, %v246_v33  ;;  %v5983_v37 = vadd.f32 0.05154639, %v235_v28  ;;  %v6065_v8 = vmul.f32 %v5956_v22, %v5956_v22 }
  0x23   : > { %5022 = vmatmul.mubr.msk.bf16.vlgmr.msra.gmra.mrb[0].mxu0 %vm434_vm0, %v5970_v30  ;;  %v5981_v36 = vpack.c.bf16 %v5972_v31, %v5965_v26  ;;  %v5985_v38 = vadd.f32 0.05154639, %v236_v32  ;;  %v248_v42 = vld [vmem:[%s5950_s12 + $0x18] sm:$0xff]  ;;  %v249_v43 = vld [vmem:[%s5950_s12 + $0x20] sm:$0xff]  ;;  %v250_v44 = vld [vmem:[%s5950_s12 + $0x28] sm:$0xff]  ;;  %v336_v63 = vunpack.c.l.bf16 %v5970_v30  ;;  %v337_v0 = vunpack.c.h.bf16 %v5970_v30  ;;  %s5799_s13 = sshll.u32 %s5859_s19, 4  ;;  %s5800_s13 = int_to_ptr.vmem [resolvable:$false] %s5799_s13 }
  0x24   : > { %5062 = vmatpush3.bf16.msra.mxu0 %v5940_v2  ;;  %v5988_v39 = vadd.f32 0.05154639, %v253_v34  ;;  %v5990_v40 = vadd.f32 0.05154639, %v254_v35  ;;  %v255_v46 = vmul.f32 0.05154639, %v247_v41  ;;  %v6059_v7 = vpack.c.bf16 %v6045_v3, %v6041_v1  ;;  %p5802_p0 = scmp.lt.s32.totalorder %s7304_s5, %s5800_s13 }
  0x25   : > { %5025 = vmatprep.mubr.msk.bf16.mxu0 %vm434_vm0, %v5981_v36  ;;  %5103 = vmatprep.subr.bf16.mxu0 %v5940_v2  ;;  %v6001_v45 = vpack.c.bf16 %v5985_v38, %v5983_v37  ;;  %v256_v47 = vmul.f32 0.05154639, %v248_v42  ;;  %v257_v49 = vmul.f32 0.05154639, %v249_v43  ;;  %v258_v50 = vmul.f32 0.05154639, %v250_v44 }
  0x26   : > { %v6005_v48 = vpack.c.bf16 %v5990_v40, %v5988_v39  ;;  %v6009_v51 = vadd.f32 0.05154639, %v255_v46  ;;  %v251_v55 = vld [vmem:[%s5950_s12 + $0x30] sm:$0xff]  ;;  %v252_v56 = vld [vmem:[%s5950_s12 + $0x38] sm:$0xff]  ;;  %v6052_v5 = vsub.f32 %v5956_v22, %v336_v63  ;;  %v6055_v6 = vsub.f32 %v5958_v23, %v337_v0  ;;  %s5795_s12 = scalar_lea.vmem %s7304_s5, 128  ;;  %s5801_s14 = scalar_lea.vmem %s5800_s13, 256 }
  0x27   : > { %v6011_v52 = vadd.f32 0.05154639, %v256_v47  ;;  %v6015_v53 = vadd.f32 0.05154639, %v257_v49  ;;  %v6017_v54 = vadd.f32 0.05154639, %v258_v50  ;;  %v6069_v9 = vmul.f32 %v5958_v23, %v5958_v23  ;;  %p5796_p11 = scmp.ne.s32.totalorder %s7304_s5, %s5795_s12  ;;  %p5803_p1 = scmp.lt.s32.totalorder %s5801_s14, %s5795_s12 }
  0x28   : > { %v259_v58 = vmul.f32 0.05154639, %v251_v55  ;;  %v260_v59 = vmul.f32 0.05154639, %v252_v56  ;;  %v334_v10 = vunpack.c.l.bf16 %v5963_v25  ;;  %v335_v11 = vunpack.c.h.bf16 %v5963_v25 }
  0x29   : > { %v6023_v57 = vpack.c.bf16 %v6011_v52, %v6009_v51  ;;  %v6027_v60 = vpack.c.bf16 %v6017_v54, %v6015_v53  ;;  %v6077_v12 = vmul.f32 %v5965_v26, %v5965_v26  ;;  %v6081_v13 = vmul.f32 %v5972_v31, %v5972_v31  ;;  %p5797_p12 = pnand %p5796_p11, %p5923_p5  ;;  %p5804_p2 = por %p5803_p1, %p5802_p0 }
  0x2a   : > { %v6031_v61 = vadd.f32 0.05154639, %v259_v58  ;;  %v6033_v62 = vadd.f32 0.05154639, %v260_v59  ;;  %v6086_v15 = vsub.f32 %v5952_v19, %v334_v10  ;;  %v6089_v16 = vsub.f32 %v5954_v20, %v335_v11 }
  0x2b   : > { %5026 = vmatmul.mubr.msk.bf16.gmra.mrb[4].mxu0 %vm434_vm0, %v6001_v45  ;;  %v6093_v17 = vpack.c.bf16 %v6069_v9, %v6065_v8  ;;  %v6099_v21 = vpack.c.bf16 %v6081_v13, %v6077_v12  ;;  %v6105_v24 = vmul.f32 %v5983_v37, %v5983_v37  ;;  %v6109_v27 = vmul.f32 %v5985_v38, %v5985_v38  ;;  %p5798_p13 = pneg %p5797_p12 }
  0x2c   : > { %5029 = vmatprep.mubr.msk.bf16.mxu0 %vm434_vm0, %v6005_v48  ;;  %v6049_v4 = vpack.c.bf16 %v6033_v62, %v6031_v61  ;;  %v338_v28 = vunpack.c.l.bf16 %v5981_v36  ;;  %v339_v29 = vunpack.c.h.bf16 %v5981_v36  ;;  %v6117_v32 = vmul.f32 %v5988_v39, %v5988_v39 }
  0x2d   : > { %v6121_v33 = vmul.f32 %v5990_v40, %v5990_v40  ;;  %v340_v34 = vunpack.c.l.bf16 %v6001_v45  ;;  %v341_v35 = vunpack.c.h.bf16 %v6001_v45  ;;  %v6139_v46 = vpack.c.bf16 %v6109_v27, %v6105_v24  ;;  %p5805_p3 = pnand %p5804_p2, %p5798_p13 }
  0x2e   : > { %v6126_v41 = vsub.f32 %v5965_v26, %v338_v28  ;;  %v6129_v42 = vsub.f32 %v5972_v31, %v339_v29  ;;  %v6153_v55 = vmul.f32 %v6009_v51, %v6009_v51  ;;  %v6157_v56 = vmul.f32 %v6011_v52, %v6011_v52 }
  0x2f   : > { %v6132_v43 = vsub.f32 %v5983_v37, %v340_v34  ;;  %v6135_v44 = vsub.f32 %v5985_v38, %v341_v35  ;;  %v6145_v49 = vpack.c.bf16 %v6121_v33, %v6117_v32  ;;  %v342_v58 = vunpack.c.l.bf16 %v6005_v48 }
  0x30   : > { %v343_v59 = vunpack.c.h.bf16 %v6005_v48  ;;  %v6165_v63 = vmul.f32 %v6015_v53, %v6015_v53  ;;  %v6169_v0 = vmul.f32 %v6017_v54, %v6017_v54  ;;  %v344_v10 = vunpack.c.l.bf16 %v6023_v57 }
  0x31   : > { %v345_v11 = vunpack.c.h.bf16 %v6023_v57  ;;  %v6174_v28 = vsub.f32 %v5988_v39, %v342_v58  ;;  %v6187_v50 = vpack.c.bf16 %v6157_v56, %v6153_v55  ;;  %v346_v47 = vunpack.c.l.bf16 %v6027_v60 }
  0x32   : > { %7377 = vst [vmem:[#allocation5_spill] sm:$0xff] %v6165_v63  ;;  %7378 = vst [vmem:[#allocation6_spill] sm:$0xff] %v6169_v0  ;;  %v6177_v29 = vsub.f32 %v5990_v40, %v343_v59  ;;  %v6180_v34 = vsub.f32 %v6009_v51, %v344_v10  ;;  %v6193_v58 = vpack.c.bf16 %v6169_v0, %v6165_v63  ;;  %v347_v14 = vunpack.c.h.bf16 %v6027_v60 }
  0x33   : > { %5030 = vmatmul.mubr.msk.bf16.gmra.mrb[8].mxu0 %vm434_vm0, %v6023_v57  ;;  %7379 = vst [vmem:[#allocation7_spill] sm:$0xff] %v6174_v28  ;;  %v6183_v35 = vsub.f32 %v6011_v52, %v345_v11  ;;  %v6201_v10 = vmul.f32 %v6031_v61, %v6031_v61  ;;  %v6205_v11 = vmul.f32 %v6033_v62, %v6033_v62  ;;  %v348_v0 = vunpack.c.l.bf16 %v6049_v4 }
  0x34   : > { %5033 = vmatprep.mubr.msk.bf16.mxu0 %vm434_vm0, %v6027_v60  ;;  %7380 = vst [vmem:[#allocation8_spill] sm:$0xff] %v6180_v34  ;;  %v6213_v59 = vmul.f32 %v5988_v39, %v5952_v19  ;;  %v6217_v18 = vmul.f32 %v5990_v40, %v5954_v20  ;;  %v349_v63 = vunpack.c.h.bf16 %v6049_v4  ;;  %v6222_v34 = vsub.f32 %v6015_v53, %v346_v47 }
  0x35   : > { %7381 = vst [vmem:[#allocation9_spill] sm:$0xff] %v6183_v35  ;;  %v6225_v35 = vsub.f32 %v6017_v54, %v347_v14  ;;  %v6228_v28 = vsub.f32 %v6031_v61, %v348_v0  ;;  %v6235_v20 = vpack.c.bf16 %v6205_v11, %v6201_v10  ;;  %v6249_v47 = vmul.f32 %v6009_v51, %v5956_v22 }
  0x36   : > { %7382 = vst [vmem:[#allocation10_spill] sm:$0xff] %v6213_v59  ;;  %7383 = vst [vmem:[#allocation11_spill] sm:$0xff] %v6217_v18  ;;  %v6231_v19 = vsub.f32 %v6033_v62, %v349_v63  ;;  %v6241_v40 = vpack.c.bf16 %v6217_v18, %v6213_v59  ;;  %v6253_v63 = vmul.f32 %v6011_v52, %v5958_v23  ;;  %v350_v0 = vunpack.c.l.bf16 %v6059_v7 }
  0x37   : > { %v351_v39 = vunpack.c.h.bf16 %v6059_v7  ;;  %v6261_v14 = vmul.f32 %v6015_v53, %v5965_v26  ;;  %v6265_v18 = vmul.f32 %v6017_v54, %v5972_v31  ;;  %v352_v22 = vunpack.c.l.bf16 %v6093_v17 }
  0x38   : > { %v353_v23 = vunpack.c.h.bf16 %v6093_v17  ;;  %v6270_v51 = vsub.f32 %v6041_v1, %v350_v0  ;;  %v6281_v53 = vpack.c.bf16 %v6253_v63, %v6249_v47  ;;  %v357_v0 = vunpack.c.h.bf16 %v6139_v46 }
  0x39   : > { %v6273_v52 = vsub.f32 %v6045_v3, %v351_v39  ;;  %v6276_v59 = vsub.f32 %v6065_v8, %v352_v22  ;;  %v6287_v54 = vpack.c.bf16 %v6265_v18, %v6261_v14  ;;  %v6294_v3 = vmul.f32 %v6031_v61, %v5983_v37 }
  0x3a   : > { %v393_v26 = vsub.f32 %v6069_v9, %v353_v23  ;;  %v6298_v8 = vmul.f32 %v6033_v62, %v5985_v38  ;;  %v354_v9 = vunpack.c.l.bf16 %v6099_v21  ;;  %v355_v39 = vunpack.c.h.bf16 %v6099_v21 }
  0x3b   : > { %5034 = vmatmul.mubr.msk.bf16.gmra.mrb[12].mxu0 %vm434_vm0, %v6049_v4  ;;  %v422_v31 = vpack.c.bf16 %v6273_v52, %v6270_v51  ;;  %v397_v38 = vsub.f32 %v6109_v27, %v357_v0  ;;  %v358_v52 = vunpack.c.l.bf16 %v6145_v49 }
  0x3c   : > { %5037 = vmatprep.mubr.msk.bf16.mxu0 %vm434_vm0, %v6059_v7  ;;  %v423_v1 = vpack.c.bf16 %v393_v26, %v6276_v59  ;;  %v356_v59 = vunpack.c.l.bf16 %v6139_v46  ;;  %v394_v22 = vsub.f32 %v6077_v12, %v354_v9  ;;  %v395_v37 = vsub.f32 %v6081_v13, %v355_v39 }
  0x3d   : > { %v6312_v62 = vpack.c.bf16 %v6298_v8, %v6294_v3  ;;  %v359_v26 = vunpack.c.h.bf16 %v6145_v49  ;;  %v360_v12 = vunpack.c.l.bf16 %v6187_v50  ;;  %v361_v13 = vunpack.c.h.bf16 %v6187_v50 }
  0x3e   : > { %v396_v61 = vsub.f32 %v6105_v24, %v356_v59  ;;  %v424_v23 = vpack.c.bf16 %v395_v37, %v394_v22  ;;  %v398_v24 = vsub.f32 %v6117_v32, %v358_v52 }
  0x3f   : > { %v399_v27 = vsub.f32 %v6121_v33, %v359_v26  ;;  %v400_v9 = vsub.f32 %v6153_v55, %v360_v12  ;;  %v401_v39 = vsub.f32 %v6157_v56, %v361_v13  ;;  %v364_v33 = vunpack.c.l.bf16 %v6235_v20  ;;  %v7398_v56 = vld [vmem:[#allocation11_spill] sm:$0xff] }
  0x40   : > { %v425_v51 = vpack.c.bf16 %v397_v38, %v396_v61  ;;  %v373_v22 = vunpack.c.h.bf16 %v6312_v62 }
  0x41   : > { %v426_v59 = vpack.c.bf16 %v399_v27, %v398_v24  ;;  %v427_v0 = vpack.c.bf16 %v401_v39, %v400_v9 }
  0x43   : > { %5038 = vmatmul.mubr.msk.bf16.gmra.mrb[16].mxu0 %vm434_vm0, %v6093_v17 }
  0x44   : > { %5041 = vmatprep.mubr.msk.bf16.mxu0 %vm434_vm0, %v6099_v21 }
  0x4b   : > { %5042 = vmatmul.mubr.msk.bf16.gmra.mrb[20].mxu0 %vm434_vm0, %v6139_v46 }
  0x4c   : > { %5045 = vmatprep.mubr.msk.bf16.mxu0 %vm434_vm0, %v6145_v49 }
  0x53   : > { %5046 = vmatmul.mubr.msk.bf16.gmra.mrb[24].mxu0 %vm434_vm0, %v6187_v50 }
  0x54   : > { %5049 = vmatprep.mubr.msk.bf16.mxu0 %vm434_vm0, %v6193_v58 }
  0x5b   : > { %5050 = vmatmul.mubr.msk.bf16.gmra.mrb[28].mxu0 %vm434_vm0, %v6235_v20 }
  0x5c   : > { %5053 = vmatprep.mubr.msk.bf16.mxu0 %vm434_vm0, %v6241_v40 }
  0x63   : > { %5054 = vmatmul.mubr.msk.bf16.gmra.mrb[32].mxu0 %vm434_vm0, %v6281_v53 }
  0x64   : > { %5057 = vmatprep.mubr.msk.bf16.mxu0 %vm434_vm0, %v6287_v54 }
  0x6b   : > { %5058 = vmatmul.mubr.msk.bf16.gmra.mrb[36].mxu0 %vm434_vm0, %v6312_v62 }
  0x6c   : > { %5063 = vmatprep.mubr.msk.bf16.mxu0 %vm434_vm0, %v5963_v25  ;;  %v7385_v25 = vpack.c.bf16 %v6055_v6, %v6052_v5  ;;  %v7393_v5 = vpack.c.bf16 %v6225_v35, %v6222_v34  ;;  %v7394_v6 = vpack.c.bf16 %v6231_v19, %v6228_v28  ;;  %v368_v34 = vunpack.c.l.bf16 %v6281_v53 }
  0x6d   : > { %v369_v35 = vunpack.c.h.bf16 %v6281_v53  ;;  %v370_v19 = vunpack.c.l.bf16 %v6287_v54 }
  0x73   : > { %5064 = vmatmul.mubr.msk.bf16.vlgmr.msra.gmra.mrb[0].mxu0 %vm434_vm0, %v5970_v30  ;;  %v7386_v30 = vpack.c.bf16 %v6129_v42, %v6126_v41  ;;  %v365_v41 = vunpack.c.h.bf16 %v6235_v20 }
  0x74   : > { %5104 = vmatpush3.bf16.msra.mxu0 %v5940_v2  ;;  %5067 = vmatprep.mubr.msk.bf16.mxu0 %vm434_vm0, %v5981_v36  ;;  %v7384_v2 = vpack.c.bf16 %v6089_v16, %v6086_v15  ;;  %v7387_v36 = vpack.c.bf16 %v6135_v44, %v6132_v43  ;;  %v363_v15 = vunpack.c.h.bf16 %v6193_v58  ;;  %v7395_v16 = vld [vmem:[#allocation5_spill] sm:$0xff]  ;;  %v366_v43 = vunpack.c.l.bf16 %v6241_v40 }
  0x75   : > { %v367_v44 = vunpack.c.h.bf16 %v6241_v40 }
  0x77   : > { %v407_v28 = vsub.f32 %v7398_v56, %v367_v44 }
  0x7b   : > { %5068 = vmatmul.mubr.msk.bf16.gmra.mrb[4].mxu0 %vm434_vm0, %v6001_v45  ;;  %v7388_v45 = vld [vmem:[#allocation7_spill] sm:$0xff] }
  0x7c   : > { %5071 = vmatprep.mubr.msk.bf16.mxu0 %vm434_vm0, %v6005_v48  ;;  %v7389_v48 = vpack.c.bf16 %v6177_v29, %v7388_v45 }
  0x83   : > { %5072 = vmatmul.mubr.msk.bf16.gmra.mrb[8].mxu0 %vm434_vm0, %v6023_v57  ;;  %v7390_v57 = vld [vmem:[#allocation9_spill] sm:$0xff] }
  0x84   : > { %5075 = vmatprep.mubr.msk.bf16.mxu0 %vm434_vm0, %v6027_v60  ;;  %v7391_v60 = vld [vmem:[#allocation8_spill] sm:$0xff] }
  0x8b   : > { %5076 = vmatmul.mubr.msk.bf16.gmra.mrb[12].mxu0 %vm434_vm0, %v6049_v4  ;;  %v7392_v4 = vpack.c.bf16 %v7390_v57, %v7391_v60 }
  0x8c   : > { %5079 = vmatprep.mubr.msk.bf16.mxu0 %vm434_vm0, %v6059_v7  ;;  %v362_v7 = vunpack.c.l.bf16 %v6193_v58 }
  0x93   : > { %5080 = vmatmul.mubr.msk.bf16.gmra.mrb[16].mxu0 %vm434_vm0, %v6093_v17  ;;  %v402_v17 = vsub.f32 %v7395_v16, %v362_v7 }
  0x94   : > { %5083 = vmatprep.mubr.msk.bf16.mxu0 %vm434_vm0, %v6099_v21  ;;  %v7396_v21 = vld [vmem:[#allocation6_spill] sm:$0xff] }
  0x95   : > { %v403_v32 = vsub.f32 %v7396_v21, %v363_v15 }
  0x97   : > { %v428_v42 = vpack.c.bf16 %v403_v32, %v402_v17 }
  0x9b   : > { %5084 = vmatmul.mubr.msk.bf16.gmra.mrb[20].mxu0 %vm434_vm0, %v6139_v46  ;;  %v404_v46 = vsub.f32 %v6201_v10, %v364_v33  ;;  %v408_v10 = vsub.f32 %v6249_v47, %v368_v34  ;;  %v413_v47 = vsub.f32 %v6298_v8, %v373_v22 }
  0x9c   : > { %5087 = vmatprep.mubr.msk.bf16.mxu0 %vm434_vm0, %v6145_v49  ;;  %v405_v49 = vsub.f32 %v6205_v11, %v365_v41  ;;  %v409_v11 = vsub.f32 %v6253_v63, %v369_v35 }
  0x9e   : > { %v429_v29 = vpack.c.bf16 %v405_v49, %v404_v46 }
  0xa3   : > { %5088 = vmatmul.mubr.msk.bf16.gmra.mrb[24].mxu0 %vm434_vm0, %v6187_v50  ;;  %v7397_v50 = vld [vmem:[#allocation10_spill] sm:$0xff] }
  0xa4   : > { %5091 = vmatprep.mubr.msk.bf16.mxu0 %vm434_vm0, %v6193_v58  ;;  %v406_v55 = vsub.f32 %v7397_v50, %v366_v43 }
  0xa6   : > { %v430_v58 = vpack.c.bf16 %v407_v28, %v406_v55 }
  0xab   : > { %5092 = vmatmul.mubr.msk.bf16.gmra.mrb[28].mxu0 %vm434_vm0, %v6235_v20  ;;  %v371_v20 = vunpack.c.h.bf16 %v6287_v54 }
  0xac   : > { %5095 = vmatprep.mubr.msk.bf16.mxu0 %vm434_vm0, %v6241_v40  ;;  %v410_v40 = vsub.f32 %v6261_v14, %v370_v19  ;;  %v6441_v14 = vld [vmem:[%s7351_s2 + $0x8] sm:$0xff] }
  0xb3   : > { %5096 = vmatmul.mubr.msk.bf16.gmra.mrb[32].mxu0 %vm434_vm0, %v6281_v53  ;;  %v372_v53 = vunpack.c.l.bf16 %v6312_v62 }
  0xb4   : > { %5099 = vmatprep.mubr.msk.bf16.mxu0 %vm434_vm0, %v6287_v54 }
  0xb5   : > { %v412_v54 = vsub.f32 %v6294_v3, %v372_v53 }
  0xb7   : > { %v433_v63 = vpack.c.bf16 %v413_v47, %v412_v54 }
  0xbb   : > { %5100 = vmatmul.mubr.msk.bf16.gmra.mrb[36].mxu0 %vm434_vm0, %v6312_v62 }
  0xbc   : > { %5105 = vmatprep.mubr.msk.bf16.mxu0 %vm434_vm0, %v7384_v2 }
  0xc3   : > { %5106 = vmatmul.mubr.msk.bf16.vlgmr.msra.gmra.mrb[0].mxu0 %vm434_vm0, %v7385_v25  ;;  %v6462_v25 = vld [vmem:[%s7351_s2 + $0x10] sm:$0x1] }
  0xc4   : > { %5109 = vmatprep.mubr.msk.bf16.mxu0 %vm434_vm0, %v7386_v30  ;;  %v6470_v60 = vpack.c.bf16 %v6462_v25, %v6462_v25 }
  0xcb   : > { %5110 = vmatmul.mubr.msk.bf16.gmra.mrb[4].mxu0 %vm434_vm0, %v7387_v36 }
  0xcc   : > { %5113 = vmatprep.mubr.msk.bf16.mxu0 %vm434_vm0, %v7389_v48 }
  0xd3   : > { %5114 = vmatmul.mubr.msk.bf16.gmra.mrb[8].mxu0 %vm434_vm0, %v7392_v4 }
  0xd4   : > { %5117 = vmatprep.mubr.msk.bf16.mxu0 %vm434_vm0, %v7393_v5 }
  0xdb   : > { %5118 = vmatmul.mubr.msk.bf16.gmra.mrb[12].mxu0 %vm434_vm0, %v7394_v6 }
  0xdc   : > { %5121 = vmatprep.mubr.msk.bf16.mxu0 %vm434_vm0, %v422_v31  ;;  %v411_v31 = vsub.f32 %v6265_v18, %v371_v20  ;;  %v6436_v18 = vld [vmem:[%s7351_s2] sm:$0xff] }
  0xdd   : > { %v6445_v3 = vpack.c.bf16 %v6441_v14, %v6436_v18 }
  0xde   : > { %v432_v37 = vpack.c.bf16 %v411_v31, %v410_v40 }
  0xdf   : > { %5237 = vmatprep.mubr.msk.bf16.mxu1 %vm434_vm0, %v6445_v3 }
  0xe3   : > { %5122 = vmatmul.mubr.msk.bf16.gmra.mrb[16].mxu0 %vm434_vm0, %v423_v1  ;;  %v431_v1 = vpack.c.bf16 %v409_v11, %v408_v10 }
  0xe4   : > { %5125 = vmatprep.mubr.msk.bf16.mxu0 %vm434_vm0, %v424_v23 }
  0xeb   : > { %5126 = vmatmul.mubr.msk.bf16.gmra.mrb[20].mxu0 %vm434_vm0, %v425_v51 }
  0xec   : > { %5129 = vmatprep.mubr.msk.bf16.mxu0 %vm434_vm0, %v426_v59 }
  0xf3   : > { %5130 = vmatmul.mubr.msk.bf16.gmra.mrb[24].mxu0 %vm434_vm0, %v427_v0 }
  0xf4   : > { %5133 = vmatprep.mubr.msk.bf16.mxu0 %vm434_vm0, %v428_v42 }
  0xfb   : > { %5134 = vmatmul.mubr.msk.bf16.gmra.mrb[28].mxu0 %vm434_vm0, %v429_v29 }
  0xfc   : > { %5137 = vmatprep.mubr.msk.bf16.mxu0 %vm434_vm0, %v430_v58 }
 0x103   : > { %5138 = vmatmul.mubr.msk.bf16.gmra.mrb[32].mxu0 %vm434_vm0, %v431_v1 }
 0x104   : > { %5141 = vmatprep.mubr.msk.bf16.mxu0 %vm434_vm0, %v432_v37 }
 0x10b   : > { %5142 = vmatmul.mubr.msk.bf16.gmra.mrb[36].mxu0 %vm434_vm0, %v433_v63 }
 0x10c   : > { %5147 = vmatprep.mubr.msk.bf16.mxu0 %vm434_vm0, %v6445_v3 }
 0x196   : > { %v5107_v8 = vpop.f32.mrb[0].mxu0 }
 0x197   : > { %v975_v61 = vpop.f32.mrb[1].mxu0 }
 0x198   : > { %v5108_v38 = vpop.f32.mrb[2].mxu0 }
 0x199   : > { %v6451_v62 = vpack.c.bf16 %v5108_v38, %v5107_v8  ;;  %v978_v23 = vpop.f32.mrb[3].mxu0 }
 0x19a   : > { %v6453_v51 = vpack.c.bf16 %v978_v23, %v975_v61 }
 0x19b   : > { %v1196_v52 = vunpack.c.l.bf16 %v6451_v62  ;;  %v1197_v26 = vunpack.c.h.bf16 %v6451_v62 }
 0x19c   : > { %v1194_v12 = vunpack.c.l.bf16 %v6453_v51  ;;  %v1195_v13 = vunpack.c.h.bf16 %v6453_v51 }
 0x19d   : > { %v1236_v24 = vsub.f32 %v5107_v8, %v1196_v52  ;;  %v1237_v27 = vsub.f32 %v5108_v38, %v1197_v26 }
 0x19e   : > { %v1234_v9 = vsub.f32 %v975_v61, %v1194_v12  ;;  %v1235_v39 = vsub.f32 %v978_v23, %v1195_v13  ;;  %v5111_v59 = vpop.f32.mrb[4].mxu0 }
 0x19f   : > { %v1275_v0 = vpack.c.bf16 %v1237_v27, %v1236_v24  ;;  %v991_v2 = vpop.f32.mrb[5].mxu0 }
 0x1a0   : > { %v1274_v30 = vpack.c.bf16 %v1235_v39, %v1234_v9  ;;  %v5112_v36 = vpop.f32.mrb[6].mxu0 }
 0x1a1   : > { %v6464_v45 = vpack.c.bf16 %v5112_v36, %v5111_v59  ;;  %v994_v48 = vpop.f32.mrb[7].mxu0 }
 0x1a2   : > { %v6466_v57 = vpack.c.bf16 %v994_v48, %v991_v2  ;;  %5145 = vmatprep.subr.bf16.mxu0 %v1274_v30 }
 0x1a3   : > { %v1200_v4 = vunpack.c.l.bf16 %v6464_v45  ;;  %v1201_v5 = vunpack.c.h.bf16 %v6464_v45  ;;  %5146 = vmatpush3.bf16.msra.mxu0 %v1274_v30 }
 0x1a4   : > { %v1198_v6 = vunpack.c.l.bf16 %v6466_v57  ;;  %v1199_v7 = vunpack.c.h.bf16 %v6466_v57  ;;  %5151 = vmatprep.subr.bf16.mxu0 %v1275_v0 }
 0x1a5   : > { %v1240_v15 = vsub.f32 %v5111_v59, %v1200_v4  ;;  %v1241_v16 = vsub.f32 %v5112_v36, %v1201_v5 }
 0x1a6   : > { %v1238_v17 = vsub.f32 %v991_v2, %v1198_v6  ;;  %v1239_v21 = vsub.f32 %v994_v48, %v1199_v7  ;;  %v5115_v32 = vpop.f32.mrb[8].mxu0  ;;  %5148 = vmatmul.mubr.msk.bf16.vlgmr.msra.gmra.mrb[40].mxu0 %vm434_vm0, %v6470_v60 }
 0x1a7   : > { %v1277_v33 = vpack.c.bf16 %v1241_v16, %v1240_v15  ;;  %v1007_v41 = vpop.f32.mrb[9].mxu0  ;;  %5152 = vmatpush3.bf16.msra.mxu0 %v1275_v0  ;;  %5153 = vmatprep.mubr.msk.bf16.mxu0 %vm434_vm0, %v6445_v3 }
 0x1a8   : > { %v1276_v42 = vpack.c.bf16 %v1239_v21, %v1238_v17  ;;  %v5116_v43 = vpop.f32.mrb[10].mxu0 }
 0x1a9   : > { %v6480_v44 = vpack.c.bf16 %v5116_v43, %v5115_v32  ;;  %v1010_v46 = vpop.f32.mrb[11].mxu0 }
 0x1aa   : > { %v6482_v49 = vpack.c.bf16 %v1010_v46, %v1007_v41  ;;  %5157 = vmatprep.subr.bf16.mxu0 %v1276_v42 }
 0x1ab   : > { %v1204_v50 = vunpack.c.l.bf16 %v6480_v44  ;;  %v1205_v55 = vunpack.c.h.bf16 %v6480_v44 }
 0x1ac   : > { %v1202_v56 = vunpack.c.l.bf16 %v6482_v49  ;;  %v1203_v28 = vunpack.c.h.bf16 %v6482_v49 }
 0x1ad   : > { %v1244_v29 = vsub.f32 %v5115_v32, %v1204_v50  ;;  %v1245_v34 = vsub.f32 %v5116_v43, %v1205_v55 }
 0x1ae   : > { %v1242_v35 = vsub.f32 %v1007_v41, %v1202_v56  ;;  %v1243_v58 = vsub.f32 %v1010_v46, %v1203_v28  ;;  %v5119_v19 = vpop.f32.mrb[12].mxu0  ;;  %5154 = vmatmul.mubr.msk.bf16.vlgmr.msra.gmra.mrb[44].mxu0 %vm434_vm0, %v6470_v60 }
 0x1af   : > { %v1279_v20 = vpack.c.bf16 %v1245_v34, %v1244_v29  ;;  %5158 = vmatpush3.bf16.msra.mxu0 %v1276_v42  ;;  %v1023_v10 = vpop.f32.mrb[13].mxu0  ;;  %5159 = vmatprep.mubr.msk.bf16.mxu0 %vm434_vm0, %v6445_v3 }
 0x1b0   : > { %v1278_v11 = vpack.c.bf16 %v1243_v58, %v1242_v35  ;;  %5163 = vmatprep.subr.bf16.mxu0 %v1277_v33  ;;  %v5120_v40 = vpop.f32.mrb[14].mxu0 }
 0x1b1   : > { %v6492_v31 = vpack.c.bf16 %v5120_v40, %v5119_v19  ;;  %v1026_v1 = vpop.f32.mrb[15].mxu0 }
 0x1b2   : > { %v6494_v53 = vpack.c.bf16 %v1026_v1, %v1023_v10 }
 0x1b3   : > { %v1208_v22 = vunpack.c.l.bf16 %v6492_v31  ;;  %v1209_v37 = vunpack.c.h.bf16 %v6492_v31 }
 0x1b4   : > { %v1206_v54 = vunpack.c.l.bf16 %v6494_v53  ;;  %v1207_v47 = vunpack.c.h.bf16 %v6494_v53 }
 0x1b5   : > { %v1248_v63 = vsub.f32 %v5119_v19, %v1208_v22  ;;  %v1249_v8 = vsub.f32 %v5120_v40, %v1209_v37 }
 0x1b6   : > { %v1246_v61 = vsub.f32 %v1023_v10, %v1206_v54  ;;  %v1247_v38 = vsub.f32 %v1026_v1, %v1207_v47  ;;  %v5123_v23 = vpop.f32.mrb[16].mxu0  ;;  %5160 = vmatmul.mubr.msk.bf16.vlgmr.msra.gmra.mrb[48].mxu0 %vm434_vm0, %v6470_v60 }
 0x1b7   : > { %v6502_v52 = vpack.c.bf16 %v1249_v8, %v1248_v63  ;;  %5164 = vmatpush3.bf16.msra.mxu0 %v1277_v33  ;;  %v1039_v26 = vpop.f32.mrb[17].mxu0  ;;  %5165 = vmatprep.mubr.msk.bf16.mxu0 %vm434_vm0, %v6445_v3 }
 0x1b8   : > { %v1280_v12 = vpack.c.bf16 %v1247_v38, %v1246_v61  ;;  %5169 = vmatprep.subr.bf16.mxu0 %v1278_v11  ;;  %v5124_v13 = vpop.f32.mrb[18].mxu0 }
 0x1b9   : > { %v6506_v24 = vpack.c.bf16 %v5124_v13, %v5123_v23  ;;  %v1042_v27 = vpop.f32.mrb[19].mxu0 }
 0x1ba   : > { %v6508_v9 = vpack.c.bf16 %v1042_v27, %v1039_v26 }
 0x1bb   : > { %v1212_v39 = vunpack.c.l.bf16 %v6506_v24  ;;  %v1213_v59 = vunpack.c.h.bf16 %v6506_v24 }
 0x1bc   : > { %v1210_v0 = vunpack.c.l.bf16 %v6508_v9  ;;  %v1211_v2 = vunpack.c.h.bf16 %v6508_v9 }
 0x1bd   : > { %v1252_v30 = vsub.f32 %v5123_v23, %v1212_v39  ;;  %v1253_v36 = vsub.f32 %v5124_v13, %v1213_v59 }
 0x1be   : > { %v1250_v48 = vsub.f32 %v1039_v26, %v1210_v0  ;;  %v1251_v4 = vsub.f32 %v1042_v27, %v1211_v2  ;;  %v5127_v5 = vpop.f32.mrb[20].mxu0  ;;  %5166 = vmatmul.mubr.msk.bf16.vlgmr.msra.gmra.mrb[52].mxu0 %vm434_vm0, %v6470_v60 }
 0x1bf   : > { %v6516_v6 = vpack.c.bf16 %v1253_v36, %v1252_v30  ;;  %5170 = vmatpush3.bf16.msra.mxu0 %v1278_v11  ;;  %v1055_v7 = vpop.f32.mrb[21].mxu0  ;;  %5171 = vmatprep.mubr.msk.bf16.mxu0 %vm434_vm0, %v6445_v3 }
 0x1c0   : > { %v6520_v15 = vpack.c.bf16 %v1251_v4, %v1250_v48  ;;  %5175 = vmatprep.subr.bf16.mxu0 %v1279_v20  ;;  %v5128_v16 = vpop.f32.mrb[22].mxu0 }
 0x1c1   : > { %v6522_v17 = vpack.c.bf16 %v5128_v16, %v5127_v5  ;;  %v1058_v21 = vpop.f32.mrb[23].mxu0 }
 0x1c2   : > { %v6524_v32 = vpack.c.bf16 %v1058_v21, %v1055_v7 }
 0x1c3   : > { %v1216_v33 = vunpack.c.l.bf16 %v6522_v17  ;;  %v1217_v41 = vunpack.c.h.bf16 %v6522_v17 }
 0x1c4   : > { %v1214_v42 = vunpack.c.l.bf16 %v6524_v32  ;;  %v1215_v43 = vunpack.c.h.bf16 %v6524_v32 }
 0x1c5   : > { %v1256_v46 = vsub.f32 %v5127_v5, %v1216_v33  ;;  %v1257_v50 = vsub.f32 %v5128_v16, %v1217_v41 }
 0x1c6   : > { %v1254_v55 = vsub.f32 %v1055_v7, %v1214_v42  ;;  %v1255_v56 = vsub.f32 %v1058_v21, %v1215_v43  ;;  %v5131_v28 = vpop.f32.mrb[24].mxu0  ;;  %5172 = vmatmul.mubr.msk.bf16.vlgmr.msra.gmra.mrb[56].mxu0 %vm434_vm0, %v6470_v60 }
 0x1c7   : > { %v6532_v29 = vpack.c.bf16 %v1257_v50, %v1256_v46  ;;  %5176 = vmatpush3.bf16.msra.mxu0 %v1279_v20  ;;  %v1071_v34 = vpop.f32.mrb[25].mxu0  ;;  %5177 = vmatprep.mubr.msk.bf16.mxu0 %vm434_vm0, %v6445_v3 }
 0x1c8   : > { %v6536_v35 = vpack.c.bf16 %v1255_v56, %v1254_v55  ;;  %5181 = vmatprep.subr.bf16.mxu0 %v1280_v12  ;;  %v5132_v58 = vpop.f32.mrb[26].mxu0 }
 0x1c9   : > { %v6538_v19 = vpack.c.bf16 %v5132_v58, %v5131_v28  ;;  %v1074_v10 = vpop.f32.mrb[27].mxu0 }
 0x1ca   : > { %v6540_v11 = vpack.c.bf16 %v1074_v10, %v1071_v34 }
 0x1cb   : > { %v1220_v40 = vunpack.c.l.bf16 %v6538_v19  ;;  %v1221_v1 = vunpack.c.h.bf16 %v6538_v19 }
 0x1cc   : > { %v1218_v22 = vunpack.c.l.bf16 %v6540_v11  ;;  %v1219_v20 = vunpack.c.h.bf16 %v6540_v11 }
 0x1cd   : > { %v1260_v37 = vsub.f32 %v5131_v28, %v1220_v40  ;;  %v1261_v54 = vsub.f32 %v5132_v58, %v1221_v1 }
 0x1ce   : > { %v1258_v47 = vsub.f32 %v1071_v34, %v1218_v22  ;;  %v1259_v63 = vsub.f32 %v1074_v10, %v1219_v20  ;;  %v5135_v8 = vpop.f32.mrb[28].mxu0  ;;  %5178 = vmatmul.mubr.msk.bf16.vlgmr.msra.gmra.mrb[60].mxu0 %vm434_vm0, %v6470_v60 }
 0x1cf   : > { %v6548_v61 = vpack.c.bf16 %v1261_v54, %v1260_v37  ;;  %5182 = vmatpush3.bf16.msra.mxu0 %v1280_v12  ;;  %v1087_v38 = vpop.f32.mrb[29].mxu0  ;;  %5183 = vmatprep.mubr.msk.bf16.mxu0 %vm434_vm0, %v6445_v3 }
 0x1d0   : > { %v6552_v23 = vpack.c.bf16 %v1259_v63, %v1258_v47  ;;  %5187 = vmatprep.subr.bf16.mxu0 %v6502_v52  ;;  %v5136_v26 = vpop.f32.mrb[30].mxu0 }
 0x1d1   : > { %v6555_v13 = vpack.c.bf16 %v5136_v26, %v5135_v8  ;;  %v1090_v27 = vpop.f32.mrb[31].mxu0 }
 0x1d2   : > { %v6557_v39 = vpack.c.bf16 %v1090_v27, %v1087_v38 }
 0x1d3   : > { %v1225_v59 = vunpack.c.h.bf16 %v6555_v13  ;;  %v1224_v0 = vunpack.c.l.bf16 %v6555_v13 }
 0x1d4   : > { %v1222_v12 = vunpack.c.l.bf16 %v6557_v39  ;;  %v1223_v2 = vunpack.c.h.bf16 %v6557_v39 }
 0x1d5   : > { %v1265_v30 = vsub.f32 %v5136_v26, %v1225_v59  ;;  %v1264_v36 = vsub.f32 %v5135_v8, %v1224_v0 }
 0x1d6   : > { %v1262_v48 = vsub.f32 %v1087_v38, %v1222_v12  ;;  %v1263_v4 = vsub.f32 %v1090_v27, %v1223_v2  ;;  %v5139_v5 = vpop.f32.mrb[32].mxu0  ;;  %5184 = vmatmul.mubr.msk.bf16.vlgmr.msra.gmra.mrb[64].mxu0 %vm434_vm0, %v6470_v60 }
 0x1d7   : > { %5188 = vmatpush3.bf16.msra.mxu0 %v6502_v52  ;;  %v1103_v7 = vpop.f32.mrb[33].mxu0  ;;  %v1289_v16 = vpack.c.bf16 %v1265_v30, %v1264_v36  ;;  %5189 = vmatprep.mubr.msk.bf16.mxu0 %vm434_vm0, %v6445_v3 }
 0x1d8   : > { %v6568_v21 = vpack.c.bf16 %v1263_v4, %v1262_v48  ;;  %5193 = vmatprep.subr.bf16.mxu0 %v6520_v15  ;;  %v5140_v33 = vpop.f32.mrb[34].mxu0 }
 0x1d9   : > { %v6571_v41 = vpack.c.bf16 %v5140_v33, %v5139_v5  ;;  %v1106_v42 = vpop.f32.mrb[35].mxu0  ;;  %5235 = vmatprep.subr.bf16.mxu1 %v1289_v16 }
 0x1da   : > { %v6573_v43 = vpack.c.bf16 %v1106_v42, %v1103_v7  ;;  %5236 = vmatpush3.bf16.msra.mxu1 %v1289_v16 }
 0x1db   : > { %v1228_v46 = vunpack.c.l.bf16 %v6571_v41  ;;  %v1229_v52 = vunpack.c.h.bf16 %v6571_v41 }
 0x1dc   : > { %v1226_v50 = vunpack.c.l.bf16 %v6573_v43  ;;  %v1227_v55 = vunpack.c.h.bf16 %v6573_v43 }
 0x1dd   : > { %v1268_v56 = vsub.f32 %v5139_v5, %v1228_v46  ;;  %v1269_v28 = vsub.f32 %v5140_v33, %v1229_v52  ;;  %5238 = vmatmul.mubr.msk.bf16.vlgmr.msra.gmra.mrb[0].mxu1 %vm434_vm0, %v6470_v60 }
 0x1de   : > { %v1266_v34 = vsub.f32 %v1103_v7, %v1226_v50  ;;  %v1267_v58 = vsub.f32 %v1106_v42, %v1227_v55  ;;  %v5143_v10 = vpop.f32.mrb[36].mxu0  ;;  %5190 = vmatmul.mubr.msk.bf16.vlgmr.msra.gmra.mrb[68].mxu0 %vm434_vm0, %v6470_v60  ;;  %5243 = vmatprep.mubr.msk.bf16.mxu1 %vm434_vm0, %v6445_v3 }
 0x1df   : > { %v1291_v40 = vpack.c.bf16 %v1269_v28, %v1268_v56  ;;  %5194 = vmatpush3.bf16.msra.mxu0 %v6520_v15  ;;  %v1119_v1 = vpop.f32.mrb[37].mxu0  ;;  %5195 = vmatprep.mubr.msk.bf16.mxu0 %vm434_vm0, %v6445_v3 }
 0x1e0   : > { %v1290_v22 = vpack.c.bf16 %v1267_v58, %v1266_v34  ;;  %5199 = vmatprep.subr.bf16.mxu0 %v6516_v6  ;;  %v5144_v20 = vpop.f32.mrb[38].mxu0 }
 0x1e1   : > { %v6589_v37 = vpack.c.bf16 %v5144_v20, %v5143_v10  ;;  %v1122_v54 = vpop.f32.mrb[39].mxu0 }
 0x1e2   : > { %v6591_v47 = vpack.c.bf16 %v1122_v54, %v1119_v1  ;;  %5241 = vmatprep.subr.bf16.mxu1 %v1290_v22 }
 0x1e3   : > { %v1232_v63 = vunpack.c.l.bf16 %v6589_v37  ;;  %v1233_v8 = vunpack.c.h.bf16 %v6589_v37  ;;  %5242 = vmatpush3.bf16.msra.mxu1 %v1290_v22 }
 0x1e4   : > { %v1230_v15 = vunpack.c.l.bf16 %v6591_v47  ;;  %v1231_v38 = vunpack.c.h.bf16 %v6591_v47  ;;  %5247 = vmatprep.subr.bf16.mxu1 %v1291_v40 }
 0x1e5   : > { %v1272_v26 = vsub.f32 %v5143_v10, %v1232_v63  ;;  %v1273_v27 = vsub.f32 %v5144_v20, %v1233_v8 }
 0x1e6   : > { %v1270_v59 = vsub.f32 %v1119_v1, %v1230_v15  ;;  %v1271_v0 = vsub.f32 %v1122_v54, %v1231_v38  ;;  %5196 = vmatmul.mubr.msk.bf16.vlgmr.msra.gmra.mrb[72].mxu0 %vm434_vm0, %v6470_v60  ;;  %5244 = vmatmul.mubr.msk.bf16.vlgmr.msra.gmra.mrb[4].mxu1 %vm434_vm0, %v6470_v60 }
 0x1e7   : > { %v1293_v12 = vpack.c.bf16 %v1273_v27, %v1272_v26  ;;  %5200 = vmatpush3.bf16.msra.mxu0 %v6516_v6  ;;  %5248 = vmatpush3.bf16.msra.mxu1 %v1291_v40  ;;  %v306_v6 = vunpack.c.l.bf16 %v6445_v3 }
 0x1e8   : > { %v1292_v2 = vpack.c.bf16 %v1271_v0, %v1270_v59  ;;  %5205 = vmatprep.subr.bf16.mxu0 %v6536_v35  ;;  %5201 = vmatprep.mubr.msk.bf16.mxu0 %vm434_vm0, %v6445_v3 }
 0x1e9   : > { %5249 = vmatprep.mubr.msk.bf16.mxu1 %vm434_vm0, %v6445_v3 }
 0x1ea   : > { %5253 = vmatprep.subr.bf16.mxu1 %v1292_v2 }
 0x1ee   : > { %5202 = vmatmul.mubr.msk.bf16.vlgmr.msra.gmra.mrb[76].mxu0 %vm434_vm0, %v6470_v60  ;;  %5250 = vmatmul.mubr.msk.bf16.vlgmr.msra.gmra.mrb[8].mxu1 %vm434_vm0, %v6470_v60 }
 0x1ef   : > { %5206 = vmatpush3.bf16.msra.mxu0 %v6536_v35  ;;  %5254 = vmatpush3.bf16.msra.mxu1 %v1292_v2  ;;  %v309_v35 = vsub.f32 %v6436_v18, %v306_v6 }
 0x1f0   : > { %5211 = vmatprep.subr.bf16.mxu0 %v6532_v29  ;;  %5259 = vmatprep.subr.bf16.mxu1 %v1293_v12 }
 0x1f1   : > { %5207 = vmatprep.mubr.msk.bf16.mxu0 %vm434_vm0, %v6445_v3  ;;  %5255 = vmatprep.mubr.msk.bf16.mxu1 %vm434_vm0, %v6445_v3 }
 0x1f6   : > { %5208 = vmatmul.mubr.msk.bf16.vlgmr.msra.gmra.mrb[80].mxu0 %vm434_vm0, %v6470_v60  ;;  %5256 = vmatmul.mubr.msk.bf16.vlgmr.msra.gmra.mrb[12].mxu1 %vm434_vm0, %v6470_v60 }
 0x1f7   : > { %5212 = vmatpush3.bf16.msra.mxu0 %v6532_v29  ;;  %5260 = vmatpush3.bf16.msra.mxu1 %v1293_v12  ;;  %v307_v29 = vunpack.c.h.bf16 %v6445_v3 }
 0x1f8   : > { %5217 = vmatprep.subr.bf16.mxu0 %v6552_v23  ;;  %5265 = vmatprep.subr.bf16.mxu1 %v6453_v51 }
 0x1f9   : > { %5213 = vmatprep.mubr.msk.bf16.mxu0 %vm434_vm0, %v6445_v3  ;;  %5261 = vmatprep.mubr.msk.bf16.mxu1 %vm434_vm0, %v6445_v3 }
 0x1fe   : > { %5214 = vmatmul.mubr.msk.bf16.vlgmr.msra.gmra.mrb[84].mxu0 %vm434_vm0, %v6470_v60  ;;  %5262 = vmatmul.mubr.msk.bf16.vlgmr.msra.gmra.mrb[16].mxu1 %vm434_vm0, %v6470_v60 }
 0x1ff   : > { %5218 = vmatpush3.bf16.msra.mxu0 %v6552_v23  ;;  %5266 = vmatpush3.bf16.msra.mxu1 %v6453_v51  ;;  %v308_v23 = vunpack.c.l.bf16 %v6470_v60 }
 0x200   : > { %5223 = vmatprep.subr.bf16.mxu0 %v6548_v61  ;;  %5271 = vmatprep.subr.bf16.mxu1 %v6451_v62 }
 0x201   : > { %5219 = vmatprep.mubr.msk.bf16.mxu0 %vm434_vm0, %v6445_v3  ;;  %5267 = vmatprep.mubr.msk.bf16.mxu1 %vm434_vm0, %v6445_v3  ;;  %v311_v36 = vsub.f32 %v6462_v25, %v308_v23 }
 0x203   : > { %v6781_v18 = vpack.c.bf16 %v311_v36, %v311_v36 }
 0x206   : > { %5220 = vmatmul.mubr.msk.bf16.vlgmr.msra.gmra.mrb[88].mxu0 %vm434_vm0, %v6470_v60  ;;  %5268 = vmatmul.mubr.msk.bf16.vlgmr.msra.gmra.mrb[20].mxu1 %vm434_vm0, %v6470_v60 }
 0x207   : > { %5224 = vmatpush3.bf16.msra.mxu0 %v6548_v61  ;;  %5272 = vmatpush3.bf16.msra.mxu1 %v6451_v62  ;;  %v310_v61 = vsub.f32 %v6441_v14, %v307_v29 }
 0x208   : > { %5229 = vmatprep.subr.bf16.mxu0 %v6568_v21  ;;  %5277 = vmatprep.subr.bf16.mxu1 %v6466_v57 }
 0x209   : > { %5225 = vmatprep.mubr.msk.bf16.mxu0 %vm434_vm0, %v6445_v3  ;;  %5273 = vmatprep.mubr.msk.bf16.mxu1 %vm434_vm0, %v6445_v3  ;;  %v6772_v30 = vpack.c.bf16 %v310_v61, %v309_v35 }
 0x20e   : > { %5226 = vmatmul.mubr.msk.bf16.vlgmr.msra.gmra.mrb[92].mxu0 %vm434_vm0, %v6470_v60  ;;  %5274 = vmatmul.mubr.msk.bf16.vlgmr.msra.gmra.mrb[24].mxu1 %vm434_vm0, %v6470_v60 }
 0x20f   : > { %5230 = vmatpush3.bf16.msra.mxu0 %v6568_v21  ;;  %5278 = vmatpush3.bf16.msra.mxu1 %v6466_v57 }
 0x210   : > { %5283 = vmatprep.subr.bf16.mxu1 %v6464_v45  ;;  %5279 = vmatprep.mubr.msk.bf16.mxu1 %vm434_vm0, %v6445_v3 }
 0x211   : > { %5231 = vmatprep.mubr.msk.bf16.mxu0 %vm434_vm0, %v6445_v3 }
 0x216   : > { %5280 = vmatmul.mubr.msk.bf16.vlgmr.msra.gmra.mrb[28].mxu1 %vm434_vm0, %v6470_v60  ;;  %5232 = vmatmul.mubr.msk.bf16.vlgmr.msra.gmra.mrb[96].mxu0 %vm434_vm0, %v6470_v60 }
 0x217   : > { %5284 = vmatpush3.bf16.msra.mxu1 %v6464_v45  ;;  %5285 = vmatprep.mubr.msk.bf16.mxu1 %vm434_vm0, %v6445_v3 }
 0x218   : > { %5289 = vmatprep.subr.bf16.mxu1 %v6482_v49 }
 0x21e   : > { %5286 = vmatmul.mubr.msk.bf16.vlgmr.msra.gmra.mrb[32].mxu1 %vm434_vm0, %v6470_v60 }
 0x21f   : > { %5290 = vmatpush3.bf16.msra.mxu1 %v6482_v49  ;;  %5291 = vmatprep.mubr.msk.bf16.mxu1 %vm434_vm0, %v6445_v3 }
 0x220   : > { %5295 = vmatprep.subr.bf16.mxu1 %v6480_v44 }
 0x226   : > { %5292 = vmatmul.mubr.msk.bf16.vlgmr.msra.gmra.mrb[36].mxu1 %vm434_vm0, %v6470_v60 }
 0x227   : > { %5296 = vmatpush3.bf16.msra.mxu1 %v6480_v44  ;;  %5297 = vmatprep.mubr.msk.bf16.mxu1 %vm434_vm0, %v6445_v3 }
 0x228   : > { %5301 = vmatprep.subr.bf16.mxu1 %v6494_v53 }
 0x22e   : > { %5298 = vmatmul.mubr.msk.bf16.vlgmr.msra.gmra.mrb[40].mxu1 %vm434_vm0, %v6470_v60 }
 0x22f   : > { %5302 = vmatpush3.bf16.msra.mxu1 %v6494_v53  ;;  %5303 = vmatprep.mubr.msk.bf16.mxu1 %vm434_vm0, %v6445_v3 }
 0x230   : > { %5307 = vmatprep.subr.bf16.mxu1 %v6492_v31 }
 0x236   : > { %5304 = vmatmul.mubr.msk.bf16.vlgmr.msra.gmra.mrb[44].mxu1 %vm434_vm0, %v6470_v60 }
 0x237   : > { %5308 = vmatpush3.bf16.msra.mxu1 %v6492_v31  ;;  %5309 = vmatprep.mubr.msk.bf16.mxu1 %vm434_vm0, %v6445_v3 }
 0x238   : > { %5313 = vmatprep.subr.bf16.mxu1 %v6508_v9 }
 0x23e   : > { %5310 = vmatmul.mubr.msk.bf16.vlgmr.msra.gmra.mrb[48].mxu1 %vm434_vm0, %v6470_v60 }
 0x23f   : > { %5314 = vmatpush3.bf16.msra.mxu1 %v6508_v9  ;;  %5315 = vmatprep.mubr.msk.bf16.mxu1 %vm434_vm0, %v6445_v3 }
 0x240   : > { %5319 = vmatprep.subr.bf16.mxu1 %v6506_v24 }
 0x246   : > { %5316 = vmatmul.mubr.msk.bf16.vlgmr.msra.gmra.mrb[52].mxu1 %vm434_vm0, %v6470_v60 }
 0x247   : > { %5320 = vmatpush3.bf16.msra.mxu1 %v6506_v24  ;;  %5321 = vmatprep.mubr.msk.bf16.mxu1 %vm434_vm0, %v6445_v3 }
 0x248   : > { %5325 = vmatprep.subr.bf16.mxu1 %v6524_v32 }
 0x24e   : > { %5322 = vmatmul.mubr.msk.bf16.vlgmr.msra.gmra.mrb[56].mxu1 %vm434_vm0, %v6470_v60 }
 0x24f   : > { %5326 = vmatpush3.bf16.msra.mxu1 %v6524_v32  ;;  %5327 = vmatprep.mubr.msk.bf16.mxu1 %vm434_vm0, %v6445_v3 }
 0x250   : > { %5331 = vmatprep.subr.bf16.mxu1 %v6522_v17 }
 0x256   : > { %5328 = vmatmul.mubr.msk.bf16.vlgmr.msra.gmra.mrb[60].mxu1 %vm434_vm0, %v6470_v60 }
 0x257   : > { %5332 = vmatpush3.bf16.msra.mxu1 %v6522_v17  ;;  %5333 = vmatprep.mubr.msk.bf16.mxu1 %vm434_vm0, %v6445_v3 }
 0x258   : > { %5337 = vmatprep.subr.bf16.mxu1 %v6540_v11 }
 0x25e   : > { %5334 = vmatmul.mubr.msk.bf16.vlgmr.msra.gmra.mrb[64].mxu1 %vm434_vm0, %v6470_v60 }
 0x25f   : > { %5338 = vmatpush3.bf16.msra.mxu1 %v6540_v11  ;;  %5339 = vmatprep.mubr.msk.bf16.mxu1 %vm434_vm0, %v6445_v3 }
 0x260   : > { %5343 = vmatprep.subr.bf16.mxu1 %v6538_v19 }
 0x266   : > { %5340 = vmatmul.mubr.msk.bf16.vlgmr.msra.gmra.mrb[68].mxu1 %vm434_vm0, %v6470_v60 }
 0x267   : > { %5344 = vmatpush3.bf16.msra.mxu1 %v6538_v19  ;;  %5345 = vmatprep.mubr.msk.bf16.mxu1 %vm434_vm0, %v6445_v3 }
 0x268   : > { %5349 = vmatprep.subr.bf16.mxu1 %v6557_v39 }
 0x26e   : > { %5346 = vmatmul.mubr.msk.bf16.vlgmr.msra.gmra.mrb[72].mxu1 %vm434_vm0, %v6470_v60 }
 0x26f   : > { %5350 = vmatpush3.bf16.msra.mxu1 %v6557_v39  ;;  %5351 = vmatprep.mubr.msk.bf16.mxu1 %vm434_vm0, %v6445_v3 }
 0x270   : > { %5355 = vmatprep.subr.bf16.mxu1 %v6555_v13 }
 0x276   : > { %5352 = vmatmul.mubr.msk.bf16.vlgmr.msra.gmra.mrb[76].mxu1 %vm434_vm0, %v6470_v60 }
 0x277   : > { %5356 = vmatpush3.bf16.msra.mxu1 %v6555_v13  ;;  %5357 = vmatprep.mubr.msk.bf16.mxu1 %vm434_vm0, %v6445_v3 }
 0x278   : > { %5361 = vmatprep.subr.bf16.mxu1 %v6573_v43 }
 0x279   : > { %v6803_v14 = vpop.f32.mrb[40].mxu0 }
 0x27e   : > { %5358 = vmatmul.mubr.msk.bf16.vlgmr.msra.gmra.mrb[0].mxu1 %vm434_vm0, %v6470_v60 }
 0x27f   : > { %5362 = vmatpush3.bf16.msra.mxu1 %v6573_v43  ;;  %5363 = vmatprep.mubr.msk.bf16.mxu1 %vm434_vm0, %v6445_v3 }
 0x280   : > { %5367 = vmatprep.subr.bf16.mxu1 %v6571_v41 }
 0x286   : > { %5364 = vmatmul.mubr.msk.bf16.vlgmr.msra.gmra.mrb[4].mxu1 %vm434_vm0, %v6470_v60 }
 0x287   : > { %5368 = vmatpush3.bf16.msra.mxu1 %v6571_v41  ;;  %5369 = vmatprep.mubr.msk.bf16.mxu1 %vm434_vm0, %v6445_v3 }
 0x288   : > { %5373 = vmatprep.subr.bf16.mxu1 %v6591_v47 }
 0x28e   : > { %5370 = vmatmul.mubr.msk.bf16.vlgmr.msra.gmra.mrb[8].mxu1 %vm434_vm0, %v6470_v60 }
 0x28f   : > { %5374 = vmatpush3.bf16.msra.mxu1 %v6591_v47  ;;  %5375 = vmatprep.mubr.msk.bf16.mxu1 %vm434_vm0, %v6445_v3 }
 0x290   : > { %5379 = vmatprep.subr.bf16.mxu1 %v6589_v37 }
 0x296   : > { %5376 = vmatmul.mubr.msk.bf16.vlgmr.msra.gmra.mrb[12].mxu1 %vm434_vm0, %v6470_v60 }
 0x297   : > { %5380 = vmatpush3.bf16.msra.mxu1 %v6589_v37  ;;  %5381 = vmatprep.mubr.msk.bf16.mxu1 %vm434_vm0, %v6445_v3  ;;  %v6851_v3 = vpop.f32.mrb[41].mxu0 }
 0x298   : > { %5385 = vmatprep.subr.bf16.mxu1 %v6453_v51 }
 0x29e   : > { %5382 = vmatmul.mubr.msk.bf16.vlgmr.msra.gmra.mrb[16].mxu1 %vm434_vm0, %v6470_v60 }
 0x29f   : > { %5386 = vmatpush3.bf16.msra.mxu1 %v6453_v51  ;;  %5387 = vmatprep.mubr.msk.bf16.mxu1 %vm434_vm0, %v6772_v30 }
 0x2a0   : > { %5391 = vmatprep.subr.bf16.mxu1 %v6451_v62 }
 0x2a6   : > { %5388 = vmatmul.mubr.msk.bf16.vlgmr.msra.gmra.mrb[20].mxu1 %vm434_vm0, %v6781_v18 }
 0x2a7   : > { %5392 = vmatpush3.bf16.msra.mxu1 %v6451_v62  ;;  %5393 = vmatprep.mubr.msk.bf16.mxu1 %vm434_vm0, %v6772_v30  ;;  %v5150_v62 = vpop.f32.mrb[42].mxu0 }
 0x2a8   : > { %5397 = vmatprep.subr.bf16.mxu1 %v6466_v57  ;;  %v6853_v51 = vpop.f32.mrb[43].mxu0 }
 0x2a9   : > { %v6860_v25 = vpop.f32.mrb[44].mxu0 }
 0x2ae   : > { %5394 = vmatmul.mubr.msk.bf16.vlgmr.msra.gmra.mrb[24].mxu1 %vm434_vm0, %v6781_v18 }
 0x2af   : > { %5398 = vmatpush3.bf16.msra.mxu1 %v6466_v57  ;;  %5399 = vmatprep.mubr.msk.bf16.mxu1 %vm434_vm0, %v6772_v30 }
 0x2b0   : > { %5403 = vmatprep.subr.bf16.mxu1 %v6464_v45 }
 0x2b6   : > { %5400 = vmatmul.mubr.msk.bf16.vlgmr.msra.gmra.mrb[28].mxu1 %vm434_vm0, %v6781_v18 }
 0x2b7   : > { %5404 = vmatpush3.bf16.msra.mxu1 %v6464_v45  ;;  %5405 = vmatprep.mubr.msk.bf16.mxu1 %vm434_vm0, %v6772_v30  ;;  %v6863_v45 = vpop.f32.mrb[45].mxu0 }
 0x2b8   : > { %5409 = vmatprep.subr.bf16.mxu1 %v6482_v49  ;;  %v5156_v57 = vpop.f32.mrb[46].mxu0 }
 0x2b9   : > { %v6865_v60 = vpop.f32.mrb[47].mxu0 }
 0x2be   : > { %5406 = vmatmul.mubr.msk.bf16.vlgmr.msra.gmra.mrb[32].mxu1 %vm434_vm0, %v6781_v18 }
 0x2bf   : > { %5410 = vmatpush3.bf16.msra.mxu1 %v6482_v49  ;;  %5411 = vmatprep.mubr.msk.bf16.mxu1 %vm434_vm0, %v6772_v30 }
 0x2c0   : > { %5415 = vmatprep.subr.bf16.mxu1 %v6480_v44 }
 0x2c6   : > { %5412 = vmatmul.mubr.msk.bf16.vlgmr.msra.gmra.mrb[36].mxu1 %vm434_vm0, %v6781_v18 }
 0x2c7   : > { %5416 = vmatpush3.bf16.msra.mxu1 %v6480_v44  ;;  %5417 = vmatprep.mubr.msk.bf16.mxu1 %vm434_vm0, %v6772_v30  ;;  %v6872_v44 = vpop.f32.mrb[48].mxu0 }
 0x2c8   : > { %5421 = vmatprep.subr.bf16.mxu1 %v6494_v53  ;;  %v6875_v49 = vpop.f32.mrb[49].mxu0 }
 0x2ce   : > { %5418 = vmatmul.mubr.msk.bf16.vlgmr.msra.gmra.mrb[40].mxu1 %vm434_vm0, %v6781_v18 }
 0x2cf   : > { %5422 = vmatpush3.bf16.msra.mxu1 %v6494_v53  ;;  %5423 = vmatprep.mubr.msk.bf16.mxu1 %vm434_vm0, %v6772_v30 }
 0x2d0   : > { %5427 = vmatprep.subr.bf16.mxu1 %v6492_v31 }
 0x2d6   : > { %5424 = vmatmul.mubr.msk.bf16.vlgmr.msra.gmra.mrb[44].mxu1 %vm434_vm0, %v6781_v18 }
 0x2d7   : > { %5428 = vmatpush3.bf16.msra.mxu1 %v6492_v31  ;;  %5429 = vmatprep.mubr.msk.bf16.mxu1 %vm434_vm0, %v6772_v30  ;;  %v5162_v31 = vpop.f32.mrb[50].mxu0 }
 0x2d8   : > { %5433 = vmatprep.subr.bf16.mxu1 %v6508_v9  ;;  %v6877_v53 = vpop.f32.mrb[51].mxu0 }
 0x2de   : > { %5430 = vmatmul.mubr.msk.bf16.vlgmr.msra.gmra.mrb[48].mxu1 %vm434_vm0, %v6781_v18 }
 0x2df   : > { %5434 = vmatpush3.bf16.msra.mxu1 %v6508_v9  ;;  %5435 = vmatprep.mubr.msk.bf16.mxu1 %vm434_vm0, %v6772_v30 }
 0x2e0   : > { %5439 = vmatprep.subr.bf16.mxu1 %v6506_v24 }
 0x2e6   : > { %5436 = vmatmul.mubr.msk.bf16.vlgmr.msra.gmra.mrb[52].mxu1 %vm434_vm0, %v6781_v18 }
 0x2e7   : > { %5440 = vmatpush3.bf16.msra.mxu1 %v6506_v24  ;;  %5441 = vmatprep.mubr.msk.bf16.mxu1 %vm434_vm0, %v6772_v30  ;;  %v6884_v24 = vpop.f32.mrb[52].mxu0 }
 0x2e8   : > { %5445 = vmatprep.subr.bf16.mxu1 %v6524_v32  ;;  %v6887_v9 = vpop.f32.mrb[53].mxu0 }
 0x2ee   : > { %5442 = vmatmul.mubr.msk.bf16.vlgmr.msra.gmra.mrb[56].mxu1 %vm434_vm0, %v6781_v18 }
 0x2ef   : > { %5446 = vmatpush3.bf16.msra.mxu1 %v6524_v32  ;;  %5447 = vmatprep.mubr.msk.bf16.mxu1 %vm434_vm0, %v6772_v30 }
 0x2f0   : > { %5451 = vmatprep.subr.bf16.mxu1 %v6522_v17 }
 0x2f6   : > { %5448 = vmatmul.mubr.msk.bf16.vlgmr.msra.gmra.mrb[60].mxu1 %vm434_vm0, %v6781_v18 }
 0x2f7   : > { %5452 = vmatpush3.bf16.msra.mxu1 %v6522_v17  ;;  %5453 = vmatprep.mubr.msk.bf16.mxu1 %vm434_vm0, %v6772_v30  ;;  %v5168_v17 = vpop.f32.mrb[54].mxu0 }
 0x2f8   : > { %5457 = vmatprep.subr.bf16.mxu1 %v6540_v11  ;;  %v6889_v32 = vpop.f32.mrb[55].mxu0 }
 0x2fe   : > { %5454 = vmatmul.mubr.msk.bf16.vlgmr.msra.gmra.mrb[64].mxu1 %vm434_vm0, %v6781_v18 }
 0x2ff   : > { %5458 = vmatpush3.bf16.msra.mxu1 %v6540_v11  ;;  %5459 = vmatprep.mubr.msk.bf16.mxu1 %vm434_vm0, %v6772_v30 }
 0x300   : > { %5463 = vmatprep.subr.bf16.mxu1 %v6538_v19 }
 0x306   : > { %5460 = vmatmul.mubr.msk.bf16.vlgmr.msra.gmra.mrb[68].mxu1 %vm434_vm0, %v6781_v18 }
 0x307   : > { %5464 = vmatpush3.bf16.msra.mxu1 %v6538_v19  ;;  %5465 = vmatprep.mubr.msk.bf16.mxu1 %vm434_vm0, %v6772_v30  ;;  %v6896_v19 = vpop.f32.mrb[56].mxu0 }
 0x308   : > { %5469 = vmatprep.subr.bf16.mxu1 %v6557_v39  ;;  %v6899_v11 = vpop.f32.mrb[57].mxu0 }
 0x30e   : > { %5466 = vmatmul.mubr.msk.bf16.vlgmr.msra.gmra.mrb[72].mxu1 %vm434_vm0, %v6781_v18 }
 0x30f   : > { %5470 = vmatpush3.bf16.msra.mxu1 %v6557_v39  ;;  %5471 = vmatprep.mubr.msk.bf16.mxu1 %vm434_vm0, %v6772_v30  ;;  %v5174_v39 = vpop.f32.mrb[58].mxu0 }
 0x310   : > { %5475 = vmatprep.subr.bf16.mxu1 %v6555_v13  ;;  %v6901_v48 = vpop.f32.mrb[59].mxu0 }
 0x316   : > { %5472 = vmatmul.mubr.msk.bf16.vlgmr.msra.gmra.mrb[76].mxu1 %vm434_vm0, %v6781_v18 }
 0x317   : > { %5476 = vmatpush3.bf16.msra.mxu1 %v6555_v13  ;;  %5477 = vmatprep.mubr.msk.bf16.mxu1 %vm434_vm0, %v6772_v30  ;;  %v6909_v13 = vpop.f32.mrb[60].mxu0 }
 0x318   : > { %5481 = vmatprep.subr.bf16.mxu1 %v6573_v43  ;;  %v6911_v4 = vpop.f32.mrb[61].mxu0 }
 0x319   : > { %v5180_v5 = vpop.f32.mrb[62].mxu0 }
 0x31a   : > { %v6913_v7 = vpop.f32.mrb[63].mxu0 }
 0x31b   : > { %v6921_v16 = vpop.f32.mrb[64].mxu0 }
 0x31c   : > { %v6923_v21 = vpop.f32.mrb[65].mxu0 }
 0x31d   : > { %v5186_v33 = vpop.f32.mrb[66].mxu0 }
 0x31e   : > { %5478 = vmatmul.mubr.msk.bf16.vlgmr.msra.gmra.mrb[0].mxu1 %vm434_vm0, %v6781_v18  ;;  %v6925_v42 = vpop.f32.mrb[67].mxu0 }
 0x31f   : > { %5482 = vmatpush3.bf16.msra.mxu1 %v6573_v43  ;;  %5483 = vmatprep.mubr.msk.bf16.mxu1 %vm434_vm0, %v6772_v30 }
 0x320   : > { %5487 = vmatprep.subr.bf16.mxu1 %v6571_v41 }
 0x326   : > { %5484 = vmatmul.mubr.msk.bf16.vlgmr.msra.gmra.mrb[4].mxu1 %vm434_vm0, %v6781_v18 }
 0x327   : > { %5488 = vmatpush3.bf16.msra.mxu1 %v6571_v41  ;;  %5489 = vmatprep.mubr.msk.bf16.mxu1 %vm434_vm0, %v6772_v30  ;;  %v6933_v41 = vpop.f32.mrb[68].mxu0 }
 0x328   : > { %5493 = vmatprep.subr.bf16.mxu1 %v6591_v47  ;;  %v6935_v43 = vpop.f32.mrb[69].mxu0 }
 0x329   : > { %v5192_v46 = vpop.f32.mrb[70].mxu0 }
 0x32a   : > { %v6937_v52 = vpop.f32.mrb[71].mxu0 }
 0x32b   : > { %v6941_v50 = vpop.f32.mrb[72].mxu0 }
 0x32c   : > { %v6946_v55 = vpop.f32.mrb[73].mxu0 }
 0x32d   : > { %v5198_v56 = vpop.f32.mrb[74].mxu0 }
 0x32e   : > { %5490 = vmatmul.mubr.msk.bf16.vlgmr.msra.gmra.mrb[8].mxu1 %vm434_vm0, %v6781_v18  ;;  %v6948_v28 = vpop.f32.mrb[75].mxu0 }
 0x32f   : > { %5494 = vmatpush3.bf16.msra.mxu1 %v6591_v47  ;;  %5495 = vmatprep.mubr.msk.bf16.mxu1 %vm434_vm0, %v6772_v30  ;;  %v6952_v34 = vpop.f32.mrb[76].mxu0 }
 0x330   : > { %5499 = vmatprep.subr.bf16.mxu1 %v6589_v37  ;;  %v6954_v58 = vpop.f32.mrb[77].mxu0 }
 0x331   : > { %v5204_v10 = vpop.f32.mrb[78].mxu0 }
 0x332   : > { %v6956_v40 = vpop.f32.mrb[79].mxu0 }
 0x333   : > { %v6958_v1 = vpop.f32.mrb[80].mxu0 }
 0x334   : > { %v6960_v22 = vpop.f32.mrb[81].mxu0 }
 0x335   : > { %v5210_v20 = vpop.f32.mrb[82].mxu0 }
 0x336   : > { %5496 = vmatmul.mubr.msk.bf16.vlgmr.msra.gmra.mrb[12].mxu1 %vm434_vm0, %v6781_v18 }
 0x337   : > { %5500 = vmatpush3.bf16.msra.mxu1 %v6589_v37  ;;  %5501 = vmatprep.mubr.msk.bf16.mxu1 %vm434_vm0, %v6772_v30  ;;  %v6962_v37 = vpop.f32.mrb[83].mxu0 }
 0x338   : > { %v6964_v54 = vpop.f32.mrb[84].mxu0 }
 0x339   : > { %v6966_v47 = vpop.f32.mrb[85].mxu0 }
 0x33a   : > { %v5216_v63 = vpop.f32.mrb[86].mxu0 }
 0x33b   : > { %v6968_v8 = vpop.f32.mrb[87].mxu0 }
 0x33c   : > { %v6970_v15 = vpop.f32.mrb[88].mxu0 }
 0x33d   : > { %v6972_v38 = vpop.f32.mrb[89].mxu0 }
 0x33e   : > { %5502 = vmatmul.mubr.msk.bf16.vlgmr.msra.gmra.mrb[16].mxu1 %vm434_vm0, %v6781_v18  ;;  %v5222_v26 = vpop.f32.mrb[90].mxu0 }
 0x33f   : > { %v6974_v27 = vpop.f32.mrb[91].mxu0 }
 0x340   : > { %v6976_v59 = vpop.f32.mrb[92].mxu0 }
 0x341   : > { %v6978_v0 = vpop.f32.mrb[93].mxu0 }
 0x342   : > { %v5228_v12 = vpop.f32.mrb[94].mxu0 }
 0x343   : > { %v6980_v2 = vpop.f32.mrb[95].mxu0 }
 0x344   : > { %v6982_v6 = vpop.f32.mrb[96].mxu0 }
 0x345   : > { %v6984_v29 = vpop.f32.mrb[97].mxu0 }
 0x346   : > { %v5234_v35 = vpop.f32.mrb[98].mxu0 }
 0x347   : > { %v6986_v61 = vpop.f32.mrb[99].mxu0 }
 0x379   : > { %v5389_v23 = vpop.f32.mrb[20].mxu1 }
 0x37a   : > { %v5505_v30 = vadd.f32 %v5389_v23, %v6803_v14  ;;  %v3260_v36 = vpop.f32.mrb[21].mxu1 }
 0x37b   : > { %v5506_v18 = vadd.f32 %v3260_v36, %v6851_v3  ;;  %v5390_v62 = vpop.f32.mrb[22].mxu1 }
 0x37c   : > { %v3263_v57 = vpop.f32.mrb[23].mxu1 }
 0x37d   : > { %v5507_v31 = vadd.f32 %v3263_v57, %v6853_v51 }
 0x381   : > { %v5395_v17 = vpop.f32.mrb[24].mxu1 }
 0x382   : > { %v5508_v39 = vadd.f32 %v5395_v17, %v6860_v25  ;;  %v3308_v5 = vpop.f32.mrb[25].mxu1 }
 0x383   : > { %v5509_v33 = vadd.f32 %v3308_v5, %v6863_v45  ;;  %v5396_v46 = vpop.f32.mrb[26].mxu1  ;;  %v7010_v5 = vmul.f32 %v5505_v30, %v5505_v30 }
 0x384   : > { %v3311_v56 = vpop.f32.mrb[27].mxu1 }
 0x385   : > { %v5510_v10 = vadd.f32 %v3311_v56, %v6865_v60 }
 0x389   : > { %v5401_v20 = vpop.f32.mrb[28].mxu1 }
 0x38a   : > { %v5511_v14 = vadd.f32 %v5401_v20, %v6872_v44  ;;  %v3356_v63 = vpop.f32.mrb[29].mxu1 }
 0x38b   : > { %v5512_v3 = vadd.f32 %v3356_v63, %v6875_v49  ;;  %v5402_v26 = vpop.f32.mrb[30].mxu1 }
 0x38c   : > { %v3359_v12 = vpop.f32.mrb[31].mxu1 }
 0x38d   : > { %v6997_v51 = vadd.f32 %v3359_v12, %v6877_v53 }
 0x391   : > { %v5407_v35 = vpop.f32.mrb[32].mxu1 }
 0x392   : > { %v7000_v25 = vadd.f32 %v5407_v35, %v6884_v24  ;;  %v3404_v45 = vpop.f32.mrb[33].mxu1 }
 0x393   : > { %v7003_v23 = vadd.f32 %v3404_v45, %v6887_v9  ;;  %v5408_v60 = vpop.f32.mrb[34].mxu1  ;;  %v7016_v9 = vmul.f32 %v5506_v18, %v5506_v18 }
 0x394   : > { %v3407_v36 = vpop.f32.mrb[35].mxu1 }
 0x395   : > { %v7006_v44 = vadd.f32 %v3407_v36, %v6889_v32 }
 0x399   : > { %v5413_v62 = vpop.f32.mrb[36].mxu1 }
 0x39a   : > { %v5517_v49 = vadd.f32 %v5413_v62, %v6896_v19  ;;  %v3452_v57 = vpop.f32.mrb[37].mxu1  ;;  %v7043_v62 = vmul.f32 %v5508_v39, %v5508_v39 }
 0x39b   : > { %v5518_v53 = vadd.f32 %v3452_v57, %v6899_v11  ;;  %v5414_v17 = vpop.f32.mrb[38].mxu1  ;;  %v7027_v11 = vmul.f32 %v5507_v31, %v5507_v31 }
 0x39c   : > { %v7012_v24 = vmul.f32 %v5517_v49, %v5517_v49  ;;  %v3455_v46 = vpop.f32.mrb[39].mxu1  ;;  %v7014_v56 = vmul.f32 %v5517_v49, %v5505_v30 }
 0x39d   : > { %v7018_v20 = vmul.f32 %v5518_v53, %v5518_v53  ;;  %v5519_v32 = vadd.f32 %v3455_v46, %v6901_v48  ;;  %v7021_v63 = vmul.f32 %v5518_v53, %v5506_v18 }
 0x39e   : > { %7399 = vst [vmem:[#allocation7_spill] sm:$0xff] %v7014_v56  ;;  %v7025_v19 = vadd.f32 %v7012_v24, %v7010_v5 }
 0x39f   : > { %7400 = vst [vmem:[#allocation9_spill] sm:$0xff] %v7021_v63  ;;  %v7031_v26 = vadd.f32 %v7018_v20, %v7016_v9  ;;  %v7033_v30 = vmul.f32 %v5519_v32, %v5519_v32  ;;  %v7035_v12 = vmul.f32 %v5519_v32, %v5507_v31  ;;  %v7049_v31 = vmul.f32 %v5509_v33, %v5509_v33 }
 0x3a1   : > { %7401 = vst [vmem:[#allocation8_spill] sm:$0xff] %v7035_v12  ;;  %v7039_v35 = vadd.f32 %v7033_v30, %v7027_v11  ;;  %v5419_v48 = vpop.f32.mrb[40].mxu1 }
 0x3a2   : > { %v5520_v18 = vadd.f32 %v5419_v48, %v6909_v13  ;;  %v3500_v45 = vpop.f32.mrb[41].mxu1 }
 0x3a3   : > { %v5521_v60 = vadd.f32 %v3500_v45, %v6911_v4  ;;  %v5420_v36 = vpop.f32.mrb[42].mxu1  ;;  %v7060_v4 = vmul.f32 %v5510_v10, %v5510_v10 }
 0x3a4   : > { %v7045_v49 = vmul.f32 %v5520_v18, %v5520_v18  ;;  %v3503_v57 = vpop.f32.mrb[43].mxu1  ;;  %v7047_v53 = vmul.f32 %v5520_v18, %v5508_v39 }
 0x3a5   : > { %v7051_v17 = vmul.f32 %v5521_v60, %v5521_v60  ;;  %v5522_v46 = vadd.f32 %v3503_v57, %v6913_v7  ;;  %v7054_v32 = vmul.f32 %v5521_v60, %v5509_v33 }
 0x3a6   : > { %7402 = vst [vmem:[#allocation5_spill] sm:$0xff] %v7047_v53  ;;  %v7058_v13 = vadd.f32 %v7045_v49, %v7043_v62 }
 0x3a7   : > { %7403 = vst [vmem:[#allocation6_spill] sm:$0xff] %v7054_v32  ;;  %v7064_v48 = vadd.f32 %v7051_v17, %v7049_v31  ;;  %v7066_v39 = vmul.f32 %v5522_v46, %v5522_v46  ;;  %v7068_v18 = vmul.f32 %v5522_v46, %v5510_v10  ;;  %v7076_v32 = vmul.f32 %v5511_v14, %v5511_v14 }
 0x3a8   : > { %v7082_v10 = vmul.f32 %v5512_v3, %v5512_v3 }
 0x3a9   : > { %7404 = vst [vmem:[#allocation10_spill] sm:$0xff] %v7068_v18  ;;  %v7072_v45 = vadd.f32 %v7066_v39, %v7060_v4  ;;  %v5425_v7 = vpop.f32.mrb[44].mxu1 }
 0x3aa   : > { %v5523_v33 = vadd.f32 %v5425_v7, %v6921_v16  ;;  %v3548_v60 = vpop.f32.mrb[45].mxu1 }
 0x3ab   : > { %v5524_v36 = vadd.f32 %v3548_v60, %v6923_v21  ;;  %v5426_v57 = vpop.f32.mrb[46].mxu1  ;;  %v7095_v21 = vmul.f32 %v6997_v51, %v6997_v51 }
 0x3ac   : > { %v7078_v53 = vmul.f32 %v5523_v33, %v5523_v33  ;;  %v3551_v12 = vpop.f32.mrb[47].mxu1  ;;  %v7080_v63 = vmul.f32 %v5523_v33, %v5511_v14 }
 0x3ad   : > { %v7084_v46 = vmul.f32 %v5524_v36, %v5524_v36  ;;  %v5525_v18 = vadd.f32 %v3551_v12, %v6925_v42  ;;  %v7087_v56 = vmul.f32 %v5524_v36, %v5512_v3 }
 0x3ae   : > { %7405 = vst [vmem:[#allocation11_spill] sm:$0xff] %v7080_v63  ;;  %v7091_v16 = vadd.f32 %v7078_v53, %v7076_v32 }
 0x3af   : > { %7406 = vst [vmem:[#allocation12_spill] sm:$0xff] %v7087_v56  ;;  %v7099_v14 = vadd.f32 %v7084_v46, %v7082_v10  ;;  %v7101_v7 = vmul.f32 %v5525_v18, %v5525_v18  ;;  %v7104_v33 = vmul.f32 %v5525_v18, %v6997_v51  ;;  %v7114_v56 = vmul.f32 %v7000_v25, %v7000_v25 }
 0x3b0   : > { %v7123_v18 = vmul.f32 %v7003_v23, %v7003_v23 }
 0x3b1   : > { %7407 = vst [vmem:[#allocation13_spill] sm:$0xff] %v7099_v14  ;;  %7408 = vst [vmem:[#allocation14_spill] sm:$0xff] %v7104_v33  ;;  %v7108_v42 = vadd.f32 %v7101_v7, %v7095_v21  ;;  %v5431_v3 = vpop.f32.mrb[48].mxu1 }
 0x3b2   : > { %v5526_v12 = vadd.f32 %v5431_v3, %v6933_v41  ;;  %v3596_v60 = vpop.f32.mrb[49].mxu1 }
 0x3b3   : > { %7409 = vst [vmem:[#allocation15_spill] sm:$0xff] %v7108_v42  ;;  %v5527_v36 = vadd.f32 %v3596_v60, %v6935_v43  ;;  %v5432_v57 = vpop.f32.mrb[50].mxu1 }
 0x3b4   : > { %v3599_v63 = vpop.f32.mrb[51].mxu1  ;;  %v7116_v14 = vmul.f32 %v5526_v12, %v5526_v12  ;;  %v7119_v51 = vmul.f32 %v5526_v12, %v7000_v25  ;;  %v7137_v57 = vmul.f32 %v7006_v44, %v7006_v44 }
 0x3b5   : > { %v5528_v41 = vadd.f32 %v3599_v63, %v6937_v52  ;;  %v7126_v3 = vmul.f32 %v5527_v36, %v5527_v36  ;;  %v7129_v43 = vmul.f32 %v5527_v36, %v7003_v23 }
 0x3b6   : > { %7410 = vst [vmem:[#allocation16_spill] sm:$0xff] %v7119_v51  ;;  %v7133_v60 = vadd.f32 %v7116_v14, %v7114_v56 }
 0x3b7   : > { %7411 = vst [vmem:[#allocation17_spill] sm:$0xff] %v7126_v3  ;;  %7412 = vst [vmem:[#allocation18_spill] sm:$0xff] %v7129_v43  ;;  %v7141_v25 = vadd.f32 %v7126_v3, %v7123_v18  ;;  %v7143_v12 = vmul.f32 %v5528_v41, %v5528_v41  ;;  %v7146_v52 = vmul.f32 %v5528_v41, %v7006_v44 }
 0x3b8   : > { %7413 = vst [vmem:[#allocation19_spill] sm:$0xff] %v7133_v60 }
 0x3b9   : > { %7414 = vst [vmem:[#allocation20_spill] sm:$0xff] %v7141_v25  ;;  %7415 = vst [vmem:[#allocation21_spill] sm:$0xff] %v7143_v12  ;;  %v5437_v63 = vpop.f32.mrb[52].mxu1  ;;  %v7150_v23 = vadd.f32 %v7143_v12, %v7137_v57 }
 0x3ba   : > { %7416 = vst [vmem:[#allocation22_spill] sm:$0xff] %v7146_v52  ;;  %v5529_v36 = vadd.f32 %v5437_v63, %v6941_v50  ;;  %v3644_v43 = vpop.f32.mrb[53].mxu1 }
 0x3bb   : > { %7417 = vst [vmem:[#allocation23_spill] sm:$0xff] %v7150_v23  ;;  %v5530_v51 = vadd.f32 %v3644_v43, %v6946_v55  ;;  %v5438_v33 = vpop.f32.mrb[54].mxu1 }
 0x3bc   : > { %v4284_v60 = vsub.f32 %v5529_v36, %v7010_v5  ;;  %v3647_v3 = vpop.f32.mrb[55].mxu1 }
 0x3bd   : > { %v4282_v25 = vsub.f32 %v5530_v51, %v7016_v9  ;;  %v5531_v42 = vadd.f32 %v3647_v3, %v6948_v28 }
 0x3bf   : > { %v4283_v44 = vsub.f32 %v5531_v42, %v7027_v11 }
 0x3c1   : > { %v5443_v41 = vpop.f32.mrb[56].mxu1 }
 0x3c2   : > { %v5532_v52 = vadd.f32 %v5443_v41, %v6952_v34  ;;  %v3692_v12 = vpop.f32.mrb[57].mxu1 }
 0x3c3   : > { %v5533_v23 = vadd.f32 %v3692_v12, %v6954_v58  ;;  %v5444_v50 = vpop.f32.mrb[58].mxu1 }
 0x3c4   : > { %v4287_v63 = vsub.f32 %v5532_v52, %v7043_v62  ;;  %v3695_v55 = vpop.f32.mrb[59].mxu1 }
 0x3c5   : > { %v4285_v33 = vsub.f32 %v5533_v23, %v7049_v31  ;;  %v5534_v5 = vadd.f32 %v3695_v55, %v6956_v40 }
 0x3c7   : > { %v4286_v9 = vsub.f32 %v5534_v5, %v7060_v4 }
 0x3c9   : > { %v5449_v51 = vpop.f32.mrb[60].mxu1 }
 0x3ca   : > { %v7165_v28 = vadd.f32 %v5449_v51, %v6958_v1  ;;  %v3740_v11 = vpop.f32.mrb[61].mxu1 }
 0x3cb   : > { %v7168_v34 = vadd.f32 %v3740_v11, %v6960_v22  ;;  %v5450_v42 = vpop.f32.mrb[62].mxu1 }
 0x3cc   : > { %v4290_v58 = vsub.f32 %v7165_v28, %v7076_v32  ;;  %v3743_v62 = vpop.f32.mrb[63].mxu1 }
 0x3cd   : > { %v4288_v31 = vsub.f32 %v7168_v34, %v7082_v10  ;;  %v7175_v40 = vadd.f32 %v3743_v62, %v6962_v37  ;;  %v7419_v10 = vld [vmem:[#allocation15_spill] sm:$0xff] }
 0x3ce   : > { %v4397_v34 = vadd.f32 0.0001, %v7419_v10  ;;  %v7431_v10 = vld [vmem:[#allocation10_spill] sm:$0xff] }
 0x3cf   : > { %v4289_v4 = vsub.f32 %v7175_v40, %v7095_v21 }
 0x3d1   : > { %v5455_v1 = vpop.f32.mrb[64].mxu1 }
 0x3d2   : > { %v7180_v3 = vadd.f32 %v5455_v1, %v6964_v54  ;;  %v3788_v22 = vpop.f32.mrb[65].mxu1 }
 0x3d3   : > { %v7183_v43 = vadd.f32 %v3788_v22, %v6966_v47  ;;  %v5456_v12 = vpop.f32.mrb[66].mxu1 }
 0x3d4   : > { %v4293_v52 = vsub.f32 %v7180_v3, %v7114_v56  ;;  %v3791_v23 = vpop.f32.mrb[67].mxu1  ;;  %v4392_v12 = vadd.f32 0.0001, %v7025_v19 }
 0x3d5   : > { %v4291_v37 = vsub.f32 %v7183_v43, %v7123_v18  ;;  %v7190_v36 = vadd.f32 %v3791_v23, %v6968_v8  ;;  %v7425_v18 = vld [vmem:[#allocation23_spill] sm:$0xff] }
 0x3d6   : > { %v4400_v43 = vadd.f32 0.0001, %v7425_v18 }
 0x3d7   : > { %v7424_v56 = vsub.f32 %v7190_v36, %v7137_v57 }
 0x3d9   : > { %v5461_v54 = vpop.f32.mrb[68].mxu1 }
 0x3da   : > { %v5541_v50 = vadd.f32 %v5461_v54, %v6970_v15  ;;  %v3836_v55 = vpop.f32.mrb[69].mxu1  ;;  %v4390_v15 = vadd.f32 0.0001, %v7031_v26 }
 0x3db   : > { %v5542_v47 = vadd.f32 %v3836_v55, %v6972_v38  ;;  %v5462_v5 = vpop.f32.mrb[70].mxu1 }
 0x3dc   : > { %v4296_v51 = vsub.f32 %v5541_v50, %v7012_v24  ;;  %v3839_v11 = vpop.f32.mrb[71].mxu1 }
 0x3dd   : > { %v4294_v42 = vsub.f32 %v5542_v47, %v7018_v20  ;;  %v5543_v62 = vadd.f32 %v3839_v11, %v6974_v27  ;;  %v4391_v20 = vadd.f32 0.0001, %v7039_v35 }
 0x3de   : > { %v4404_v1 = vadd.f32 %v4296_v51, %v4284_v60 }
 0x3df   : > { %v4402_v8 = vadd.f32 %v4294_v42, %v4282_v25  ;;  %v4295_v22 = vsub.f32 %v5543_v62, %v7033_v30  ;;  %v4395_v42 = vadd.f32 0.0001, %v7058_v13 }
 0x3e0   : > { %v4416_v23 = vadd.f32 0.0009, %v4404_v1 }
 0x3e1   : > { %v4414_v54 = vadd.f32 0.0009, %v4402_v8  ;;  %v4403_v41 = vadd.f32 %v4295_v22, %v4283_v44  ;;  %v5467_v38 = vpop.f32.mrb[72].mxu1 }
 0x3e2   : > { %v4428_v55 = vmul.f32 %v4416_v23, %v4392_v12  ;;  %v5544_v24 = vadd.f32 %v5467_v38, %v6976_v59  ;;  %v3884_v50 = vpop.f32.mrb[73].mxu1 }
 0x3e3   : > { %v4426_v47 = vmul.f32 %v4414_v54, %v4390_v15  ;;  %v4415_v27 = vadd.f32 0.0009, %v4403_v41  ;;  %v5545_v60 = vadd.f32 %v3884_v50, %v6978_v0  ;;  %v5468_v25 = vpop.f32.mrb[74].mxu1  ;;  %v4393_v41 = vadd.f32 0.0001, %v7064_v48  ;;  %v7418_v54 = vld [vmem:[#allocation13_spill] sm:$0xff] }
 0x3e4   : > { %v4299_v30 = vsub.f32 %v5544_v24, %v7045_v49  ;;  %v3887_v19 = vpop.f32.mrb[75].mxu1  ;;  %v4398_v15 = vadd.f32 0.0001, %v7091_v16  ;;  %v4396_v38 = vadd.f32 0.0001, %v7418_v54  ;;  %v7420_v16 = vld [vmem:[#allocation17_spill] sm:$0xff]  ;;  %5771 = vrcp.f32 %v4428_v55 }
 0x3e5   : > { %v4427_v5 = vmul.f32 %v4415_v27, %v4391_v20  ;;  %v4297_v26 = vsub.f32 %v5545_v60, %v7051_v17  ;;  %v5546_v44 = vadd.f32 %v3887_v19, %v6980_v2  ;;  %v4394_v17 = vadd.f32 0.0001, %v7072_v45  ;;  %v7422_v25 = vld [vmem:[#allocation19_spill] sm:$0xff]  ;;  %v7429_v54 = vld [vmem:[#allocation5_spill] sm:$0xff] }
 0x3e6   : > { %v4407_v51 = vadd.f32 %v4299_v30, %v4287_v63  ;;  %v4401_v30 = vadd.f32 0.0001, %v7422_v25  ;;  %5773 = vrcp.f32 %v4426_v47 }
 0x3e7   : > { %v4405_v11 = vadd.f32 %v4297_v26, %v4285_v33  ;;  %v4298_v59 = vsub.f32 %v5546_v44, %v7066_v39  ;;  %v7423_v26 = vld [vmem:[#allocation20_spill] sm:$0xff]  ;;  %5775 = vrcp.f32 %v4427_v5 }
 0x3e8   : > { %v4419_v35 = vadd.f32 0.0009, %v4407_v51  ;;  %v4399_v44 = vadd.f32 0.0001, %v7423_v26 }
 0x3e9   : > { %v4417_v62 = vadd.f32 0.0009, %v4405_v11  ;;  %v4406_v0 = vadd.f32 %v4298_v59, %v4286_v9  ;;  %v5473_v1 = vpop.f32.mrb[76].mxu1 }
 0x3ea   : > { %v4431_v8 = vmul.f32 %v4419_v35, %v4395_v42  ;;  %v5547_v49 = vadd.f32 %v5473_v1, %v6982_v6  ;;  %v3932_v22 = vpop.f32.mrb[77].mxu1  ;;  %v7426_v42 = vld [vmem:[#allocation7_spill] sm:$0xff] }
 0x3eb   : > { %v4429_v12 = vmul.f32 %v4417_v62, %v4393_v41  ;;  %v4418_v2 = vadd.f32 0.0009, %v4406_v0  ;;  %v5548_v63 = vadd.f32 %v3932_v22, %v6984_v29  ;;  %v5474_v33 = vpop.f32.mrb[78].mxu1  ;;  %v4320_v55 = vmul.f32 2.0, %v7426_v42  ;;  %v7427_v0 = vld [vmem:[#allocation9_spill] sm:$0xff]  ;;  %v7428_v22 = vld [vmem:[#allocation8_spill] sm:$0xff] }
 0x3ec   : > { %v4302_v39 = vsub.f32 %v5547_v49, %v7078_v53  ;;  %v3935_v13 = vpop.f32.mrb[79].mxu1  ;;  %v4318_v36 = vmul.f32 2.0, %v7427_v0  ;;  %5777 = vrcp.f32 %v4431_v8 }
 0x3ed   : > { %v7215_v23 = vmul.f32 %v4418_v2, %v4394_v17  ;;  %v4300_v48 = vsub.f32 %v5548_v63, %v7084_v46  ;;  %v5549_v9 = vadd.f32 %v3935_v13, %v6986_v61  ;;  %v4319_v17 = vmul.f32 2.0, %v7428_v22 }
 0x3ee   : > { %v4410_v6 = vadd.f32 %v4302_v39, %v4290_v58  ;;  %v4332_v5 = vadd.f32 0.0001, %v4320_v55  ;;  %v4330_v39 = vadd.f32 0.0001, %v4318_v36  ;;  %5779 = vrcp.f32 %v4429_v12 }
 0x3ef   : > { %v4408_v45 = vadd.f32 %v4300_v48, %v4288_v31  ;;  %v4301_v29 = vsub.f32 %v5549_v9, %v7101_v7  ;;  %5781 = vrcp.f32 %v7215_v23 }
 0x3f0   : > { %v4422_v53 = vadd.f32 0.0009, %v4410_v6  ;;  %v4331_v6 = vadd.f32 0.0001, %v4319_v17 }
 0x3f1   : > { %v4420_v24 = vadd.f32 0.0009, %v4408_v45  ;;  %v4409_v61 = vadd.f32 %v4301_v29, %v4289_v4  ;;  %v5479_v46 = vpop.f32.mrb[0].mxu1  ;;  %v7421_v4 = vld [vmem:[#allocation21_spill] sm:$0xff]  ;;  %v5772_v45 = vpop.eup %5771 }
 0x3f2   : > { %v7231_v50 = vmul.f32 %v4422_v53, %v4398_v15  ;;  %v4305_v32 = vsub.f32 %v5479_v46, %v7116_v14  ;;  %v3980_v28 = vpop.f32.mrb[1].mxu1  ;;  %v5774_v46 = vpop.eup %5773 }
 0x3f3   : > { %v7235_v58 = vmul.f32 %v4420_v24, %v4396_v38  ;;  %v4421_v7 = vadd.f32 0.0009, %v4409_v61  ;;  %v4303_v31 = vsub.f32 %v3980_v28, %v7420_v16  ;;  %v5480_v20 = vpop.f32.mrb[2].mxu1  ;;  %v4323_v38 = vmul.f32 2.0, %v7429_v54  ;;  %v7430_v24 = vld [vmem:[#allocation6_spill] sm:$0xff] }
 0x3f4   : > { %v4413_v27 = vadd.f32 %v4305_v32, %v4293_v52  ;;  %v3983_v21 = vpop.f32.mrb[3].mxu1  ;;  %v4321_v61 = vmul.f32 2.0, %v7430_v24  ;;  %v5776_v20 = vpop.eup %5775  ;;  %5783 = vrcp.f32 %v7231_v50  ;;  %v7433_v50 = vld [vmem:[#allocation12_spill] sm:$0xff] }
 0x3f5   : > { %v7241_v40 = vmul.f32 %v4421_v7, %v4397_v34  ;;  %v4411_v14 = vadd.f32 %v4303_v31, %v4291_v37  ;;  %v4304_v60 = vsub.f32 %v3983_v21, %v7421_v4  ;;  %v4322_v34 = vmul.f32 2.0, %v7431_v10 }
 0x3f6   : > { %v4425_v19 = vadd.f32 0.0009, %v4413_v27  ;;  %v4335_v4 = vadd.f32 0.0001, %v4323_v38  ;;  %5785 = vrcp.f32 %v7235_v58 }
 0x3f7   : > { %v4423_v51 = vadd.f32 0.0009, %v4411_v14  ;;  %v4412_v3 = vadd.f32 %v4304_v60, %v7424_v56  ;;  %5787 = vrcp.f32 %v7241_v40 }
 0x3f8   : > { %v7252_v52 = vmul.f32 %v4425_v19, %v4401_v30  ;;  %v4333_v30 = vadd.f32 0.0001, %v4321_v61  ;;  %v4334_v19 = vadd.f32 0.0001, %v4322_v34 }
 0x3f9   : > { %v7254_v11 = vmul.f32 %v4423_v51, %v4399_v44  ;;  %v4424_v37 = vadd.f32 0.0009, %v4412_v3  ;;  %v5485_v59 = vpop.f32.mrb[4].mxu1 }
 0x3fa   : > { %v4308_v35 = vsub.f32 %v5485_v59, %v7426_v42  ;;  %v4028_v41 = vpop.f32.mrb[5].mxu1  ;;  %v5778_v59 = vpop.eup %5777  ;;  %5789 = vrcp.f32 %v7252_v52 }
 0x3fb   : > { %v7259_v62 = vmul.f32 %v4424_v37, %v4400_v43  ;;  %v4306_v57 = vsub.f32 %v4028_v41, %v7427_v0  ;;  %v5486_v47 = vpop.f32.mrb[6].mxu1  ;;  %v7432_v43 = vld [vmem:[#allocation11_spill] sm:$0xff]  ;;  %v4324_v41 = vmul.f32 2.0, %v7433_v50  ;;  %5791 = vrcp.f32 %v7254_v11 }
 0x3fc   : > { %v4344_v1 = vmul.f32 2.0, %v4308_v35  ;;  %v4031_v49 = vpop.f32.mrb[7].mxu1  ;;  %v4326_v37 = vmul.f32 2.0, %v7432_v43 }
 0x3fd   : > { %v4342_v2 = vmul.f32 2.0, %v4306_v57  ;;  %v4307_v63 = vsub.f32 %v4031_v49, %v7428_v22  ;;  %v5780_v57 = vpop.eup %5779  ;;  %5793 = vrcp.f32 %v7259_v62 }
 0x3fe   : > { %v4356_v33 = vadd.f32 0.0009, %v4344_v1 }
 0x3ff   : > { %v4354_v13 = vadd.f32 0.0009, %v4342_v2  ;;  %v4343_v48 = vmul.f32 2.0, %v4307_v63  ;;  %v5782_v63 = vpop.eup %5781 }
 0x400   : > { %v4368_v9 = vmul.f32 %v4356_v33, %v4332_v5  ;;  %v5784_v61 = vpop.eup %5783 }
 0x401   : > { %v4366_v29 = vmul.f32 %v4354_v13, %v4330_v39  ;;  %v4355_v15 = vadd.f32 0.0009, %v4343_v48  ;;  %v5491_v53 = vpop.f32.mrb[8].mxu1  ;;  %v7434_v39 = vld [vmem:[#allocation14_spill] sm:$0xff] }
 0x402   : > { %v4452_v32 = vmul.f32 %v5772_v45, %v4368_v9  ;;  %v4311_v8 = vsub.f32 %v5491_v53, %v7429_v54  ;;  %v4076_v28 = vpop.f32.mrb[9].mxu1  ;;  %v4325_v13 = vmul.f32 2.0, %v7434_v39  ;;  %v4338_v45 = vadd.f32 0.0001, %v4326_v37 }
 0x403   : > { %v4450_v12 = vmul.f32 %v5774_v46, %v4366_v29  ;;  %v4367_v7 = vmul.f32 %v4355_v15, %v4331_v6  ;;  %v4309_v16 = vsub.f32 %v4076_v28, %v7430_v24  ;;  %v5492_v31 = vpop.f32.mrb[10].mxu1  ;;  %v4336_v15 = vadd.f32 0.0001, %v4324_v41 }
 0x404   : > { %v4347_v27 = vmul.f32 2.0, %v4311_v8  ;;  %v4079_v21 = vpop.f32.mrb[11].mxu1  ;;  %v4467_v0 = vsel %vm4466_vm2, %v4452_v32, 0.0  ;;  %v4337_v32 = vadd.f32 0.0001, %v4325_v13  ;;  %v5786_v31 = vpop.eup %5785 }
 0x405   : > { %v4451_v14 = vmul.f32 %v5776_v20, %v4367_v7  ;;  %v4345_v60 = vmul.f32 2.0, %v4309_v16  ;;  %v4310_v23 = vsub.f32 %v4079_v21, %v7431_v10  ;;  %v4463_v26 = vsel %vm4462_vm1, %v4450_v12, 0.0  ;;  %v7435_v12 = vld [vmem:[#allocation16_spill] sm:$0xff] }
 0x406   : > { %v4359_v25 = vadd.f32 0.0009, %v4347_v27  ;;  %v4329_v7 = vmul.f32 2.0, %v7435_v12 }
 0x407   : > { %v4464_v44 = vsel %vm4462_vm1, %v4451_v14, 0.0  ;;  %v4357_v51 = vadd.f32 0.0009, %v4345_v60  ;;  %v4346_v56 = vmul.f32 2.0, %v4310_v23 }
 0x408   : > { %v4465_v3 = vadd.f32 %v4464_v44, %v4463_v26  ;;  %v4371_v18 = vmul.f32 %v4359_v25, %v4335_v4  ;;  %v7436_v4 = vld [vmem:[#allocation18_spill] sm:$0xff] }
 0x409   : > { %v4369_v42 = vmul.f32 %v4357_v51, %v4333_v30  ;;  %v4358_v35 = vadd.f32 0.0009, %v4346_v56  ;;  %v5497_v55 = vpop.f32.mrb[12].mxu1  ;;  %v4327_v23 = vmul.f32 2.0, %v7436_v4  ;;  %v5788_v30 = vpop.eup %5787  ;;  %v7437_v44 = vld [vmem:[#allocation22_spill] sm:$0xff] }
 0x40a   : > { %v4455_v36 = vmul.f32 %v5778_v59, %v4371_v18  ;;  %v4314_v47 = vsub.f32 %v5497_v55, %v7432_v43  ;;  %v4124_v1 = vpop.f32.mrb[13].mxu1  ;;  %v4468_v58 = vadd.f32 %v4467_v0, %v4465_v3  ;;  %v4328_v51 = vmul.f32 2.0, %v7437_v44 }
 0x40b   : > { %v4453_v49 = vmul.f32 %v5780_v57, %v4369_v42  ;;  %v4370_v22 = vmul.f32 %v4358_v35, %v4334_v19  ;;  %v4312_v17 = vsub.f32 %v4124_v1, %v7433_v50  ;;  %v5498_v2 = vpop.f32.mrb[14].mxu1  ;;  %v4341_v43 = vadd.f32 0.0001, %v4329_v7  ;;  %v5790_v57 = vpop.eup %5789 }
 0x40c   : > { %v4350_v5 = vmul.f32 2.0, %v4314_v47  ;;  %v4127_v33 = vpop.f32.mrb[15].mxu1  ;;  %v4473_v16 = vsel %vm4466_vm2, %v4455_v36, 0.0  ;;  %v4339_v35 = vadd.f32 0.0001, %v4327_v23 }
 0x40d   : > { %v4469_v48 = vsel %vm4462_vm1, %v4453_v49, 0.0  ;;  %v4454_v9 = vmul.f32 %v5782_v63, %v4370_v22  ;;  %v4348_v6 = vmul.f32 2.0, %v4312_v17  ;;  %v4313_v40 = vsub.f32 %v4127_v33, %v7434_v39  ;;  %v5792_v49 = vpop.eup %5791 }
 0x40e   : > { %v4362_v29 = vadd.f32 0.0009, %v4350_v5  ;;  %v4470_v53 = vadd.f32 %v4469_v48, %v4468_v58  ;;  %v4340_v47 = vadd.f32 0.0001, %v4328_v51  ;;  %v5794_v5 = vpop.eup %5793 }
 0x40f   : > { %v4471_v54 = vsel %vm4462_vm1, %v4454_v9, 0.0  ;;  %v4360_v38 = vadd.f32 0.0009, %v4348_v6  ;;  %v4349_v24 = vmul.f32 2.0, %v4313_v40 }
 0x410   : > { %v4374_v46 = vmul.f32 %v4362_v29, %v4338_v45  ;;  %v4472_v8 = vadd.f32 %v4471_v54, %v4470_v53 }
 0x411   : > { %v4372_v28 = vmul.f32 %v4360_v38, %v4336_v15  ;;  %v4361_v10 = vadd.f32 0.0009, %v4349_v24  ;;  %v5503_v34 = vpop.f32.mrb[16].mxu1 }
 0x412   : > { %v4458_v52 = vmul.f32 %v5784_v61, %v4374_v46  ;;  %v4317_v20 = vsub.f32 %v5503_v34, %v7435_v12  ;;  %v4172_v27 = vpop.f32.mrb[17].mxu1  ;;  %v4474_v21 = vadd.f32 %v4473_v16, %v4472_v8 }
 0x413   : > { %v4456_v14 = vmul.f32 %v5786_v31, %v4372_v28  ;;  %v4373_v11 = vmul.f32 %v4361_v10, %v4337_v32  ;;  %v4315_v60 = vsub.f32 %v4172_v27, %v7436_v4  ;;  %v5504_v25 = vpop.f32.mrb[18].mxu1 }
 0x414   : > { %v4353_v19 = vmul.f32 2.0, %v4317_v20  ;;  %v4175_v26 = vpop.f32.mrb[19].mxu1  ;;  %v4479_v58 = vsel %vm4466_vm2, %v4458_v52, 0.0 }
 0x415   : > { %v4475_v56 = vsel %vm4462_vm1, %v4456_v14, 0.0  ;;  %v4457_v62 = vmul.f32 %v5788_v30, %v4373_v11  ;;  %v4351_v3 = vmul.f32 2.0, %v4315_v60  ;;  %v4316_v18 = vsub.f32 %v4175_v26, %v7437_v44 }
 0x416   : > { %v4365_v37 = vadd.f32 0.0009, %v4353_v19  ;;  %v4476_v59 = vadd.f32 %v4475_v56, %v4474_v21 }
 0x417   : > { %v4477_v42 = vsel %vm4462_vm1, %v4457_v62, 0.0  ;;  %v4363_v55 = vadd.f32 0.0009, %v4351_v3  ;;  %v4352_v50 = vmul.f32 2.0, %v4316_v18 }
 0x418   : > { %v4377_v41 = vmul.f32 %v4365_v37, %v4341_v43  ;;  %v4478_v0 = vadd.f32 %v4477_v42, %v4476_v59 }
 0x419   : > { %v4375_v36 = vmul.f32 %v4363_v55, %v4339_v35  ;;  %v4364_v1 = vadd.f32 0.0009, %v4352_v50 }
 0x41a   : > { %v4461_v22 = vmul.f32 %v5790_v57, %v4377_v41  ;;  %v4480_v17 = vadd.f32 %v4479_v58, %v4478_v0 }
 0x41b   : > { %v4459_v2 = vmul.f32 %v5792_v49, %v4375_v36  ;;  %v4376_v63 = vmul.f32 %v4364_v1, %v4340_v47 }
 0x41c   : > { %v4485_v6 = vsel %vm4466_vm2, %v4461_v22, 0.0 }
 0x41d   : > { %v4460_v33 = vmul.f32 %v5794_v5, %v4376_v63  ;;  %v4481_v39 = vsel %vm4462_vm1, %v4459_v2, 0.0 }
 0x41e   : > { %v4482_v13 = vadd.f32 %v4481_v39, %v4480_v17 }
 0x41f   : > { %v4483_v48 = vsel %vm4462_vm1, %v4460_v33, 0.0 }
 0x420   : > { %v4484_v9 = vadd.f32 %v4483_v48, %v4482_v13 }
 0x422   : > { %v4486_v40 = vadd.f32 %v4485_v6, %v4484_v9 }
 0x424   : > { %4487 = vadd.xlane.f32.xlu0 %v4486_v40 }
 0x4b1   : > { %v4488_v45 = vpop.xlane.xlu0 %4487 }
 0x4b2   : > { %v4489_v29 = vrot.slane %v4488_v45, 4 }
 0x4b4   : > { %v4490_v15 = vadd.f32 %v4489_v29, %v4488_v45 }
 0x4b6   : > { %v4491_v53 = vrot.slane %v4490_v15, 2 }
 0x4b8   : > { %v4492_v54 = vadd.f32 %v4491_v53, %v4490_v15 }
 0x4ba   : > { %v4493_v38 = vrot.slane %v4492_v54, 1 }
 0x4bc   : > { %v4494_v24 = vadd.f32 %v4493_v38, %v4492_v54 }
 0x4be   : > { %5730 = vpush %v4494_v24 }
 0x4ef   : > { %s5731_s7 = spop %5730 }
 0x4f0   : > { %v4496_v61 = vstv %s5731_s7 }
 0x4f1   : > { %4497 = vst [vmem:[%s207_s30] sm:$0xff] %v4496_v61 }
 0x4f2   : > { %5808 = shalt.err (!%p5805_p3)
}
 0x4f3   : > { %s5809_s20 = scalar_lea.hbm %s7309_s10, 128  ;;  %s5813_s27 = scalar_lea.hbm %s7353_s4, 256 }
 0x4f4   : > { %p5810_p4 = scmp.ne.s32.totalorder %s7309_s10, %s5809_s20  ;;  %p5814_p9 = scmp.lt.u32.totalorder %s7309_s10, %s7353_s4 }
 0x4f5   : > { %p5815_p10 = scmp.lt.u32.totalorder %s5813_s27, %s5809_s20  ;;  %p5817_p12 = scmp.lt.u32.totalorder %s5809_s20, %s7309_s10 }
 0x4f6   : > { %p5811_p7 = pnand %p5810_p4, %p5923_p5 }
 0x4f7   : > { %p5816_p11 = por %p5815_p10, %p5814_p9 }
 0x4f8   : > { %p5812_p8 = pneg %p5811_p7 }
 0x4f9   : > { %p5818_p13 = por %p5817_p12, %p5816_p11 }
 0x4fb   : > { %p5819_p0 = pnand %p5818_p13, %p5812_p8 }
 0x4fd   : > { %5822 = shalt.err (!%p5819_p0)
}
 0x4fe   : > { %5732 = dma.vmem_to_hbm [thread:$0]  (%p5923_p5), %s7304_s5, 128, %s7309_s10, %s4499_s11  }
 0x4ff PF: > { %p5738_p1 = scmp.ge.s32.totalorder %s5857_s18, 2  ;;  %s4524_s30 = sand.u32 1, %s5845_s15  }
 0x500   : > { %s4525_s6 = scalar_lea.sflag [#allocation3], %s4524_s30 }
 0x501   : > { %p5735_p2 = pnand %p5738_p1, %p5927_p6 }
 0x503   : > { %5840 = dma.done.wait (!%p5735_p2), %s4525_s6, 128  }
 0x504   : > { %5842 = vsyncadd (!%p5735_p2), %s4525_s6, 4294967168  ;;  %p14_p3 = scmp.ge.s32.totalorder %s5910_s21, 4   ;;  %s7438_s15 = smov %s5849_s16 }
 0x505   : > { %s7439_s16 = smov %s5853_s17  ;;  %s7440_s17 = smov %s5921_s24 }
 0x506   : > { %s7441_s18 = smov %s5910_s21  ;;  %16 = sbr.rel (!%p14_p3) target bundleno = 3 (0x3), region = 74 }
 0x50d   :  { %4530 = vsyncpa [#allocation3], 1 }
 0x50e   :  { %4532 = vsyncpa [#allocation3 + $0x1], 1 }

</bundles_post_ra>
